<compile_context>
chip_gen: v5e
topology: v5e:2x2
jax: 0.10.0
libtpu: 0.0.40
codegen_flags: <defaults>
</compile_context>

<pallas_src>
import functools

import jax
import jax.numpy as jnp
import numpy as np
from jax import lax
from jax.experimental import pallas as pl
from jax.experimental.pallas import tpu as pltpu


def _local_grouper_kernel(finit_ref, xyzt_ref, xyz_ref, pts_ref, alpha_ref, beta_ref,
                          new_xyz_ref, new_pts_ref,
                          *, npoint, kneighbors, dim, chains):
    f32 = jnp.float32
    S, K, D, C = npoint, kneighbors, dim, chains
    Cg = D + 3
    Cout = 2 * D + 3
    b = pl.program_id(0)

    xyz_t = xyzt_ref[...]                                   # (C, 3, N)  lane-major xyz
    N = xyz_t.shape[-1]

    iota_lane = lax.broadcasted_iota(jnp.int32, (1, N), 1)          # (1, N)
    iota_lane_f = iota_lane.astype(f32)
    iota_lane3 = lax.broadcasted_iota(jnp.int32, (1, 1, N), 2)      # (1, 1, N)
    iota_s = lax.broadcasted_iota(jnp.int32, (1, S), 1)             # (1, S)
    sub_c = lax.broadcasted_iota(jnp.int32, (C, 1), 0)              # (C, 1)

    # Initial farthest index per chain from the scalar-prefetch seeds (SMEM).
    far0 = jnp.zeros((C, 1), jnp.int32)
    for j in range(C):
        far0 = jnp.where(sub_c == j, finit_ref[b * C + j], far0)

    # ------------- FPS: C independent chains vectorized along the sublane axis -------------
    # Only indices are recorded in the serial loop (no feature loads / dynamic stores).
    def fps_body(i, carry):
        distance, farthest, idx_rows = carry            # (C,N) f32, (C,1) i32, (C,S) f32
        idx_rows = jnp.where(iota_s == i, farthest.astype(f32), idx_rows)
        sel = (iota_lane3 == farthest[:, :, None]).astype(f32)            # (C,1,N)
        centroid = jnp.sum(xyz_t * sel, axis=2, keepdims=True)            # (C,3,1) exact
        diff = xyz_t - centroid                                           # (C,3,N)
        dist = jnp.sum(diff * diff, axis=1)                               # (C,N)
        distance = jnp.minimum(distance, dist)
        maxval = jnp.max(distance, axis=1, keepdims=True)                 # (C,1)
        farthest = jnp.min(jnp.where(distance >= maxval, iota_lane, N),
                           axis=1, keepdims=True)                         # (C,1) first max
        return distance, farthest, idx_rows

    _, _, idx_rows = lax.fori_loop(
        0, S, fps_body,
        (jnp.full((C, N), 1e10, dtype=f32), far0, jnp.zeros((C, S), f32)))

    idx_cols = jnp.transpose(idx_rows)                   # (S, C): single tiny XLU transpose

    alpha = alpha_ref[...]                               # (1, Cg)
    beta = beta_ref[...]                                 # (1, Cg)
    n_el = S * K * Cg
    BIG = jnp.float32(1e30)

    for j in range(C):                                   # grouping per chain
        xyz_tb = xyz_t[j]                                # (3, N)
        xyz_b = xyz_ref[j]                               # (N, 3)
        pts_b = pts_ref[j]                               # (N, D)

        idx_col = idx_cols[:, j:j + 1]                                        # (S, 1)
        anchor_oh = (iota_lane_f == idx_col).astype(f32)                      # (S, N)

        # Exact anchor-xyz gather on the VPU (masked lane sum), one coordinate at a time.
        nx = [jnp.sum(anchor_oh * xyz_tb[c:c + 1, :], axis=1, keepdims=True)
              for c in range(3)]                                              # 3 x (S, 1)
        nxyz = jnp.concatenate(nx, axis=1)                                    # (S, 3)

        # Squared distances on the VPU (no contraction-3 MXU matmul, no cancellation).
        sqr = ((nx[0] - xyz_tb[0:1, :]) ** 2
               + (nx[1] - xyz_tb[1:2, :]) ** 2
               + (nx[2] - xyz_tb[2:3, :]) ** 2)                               # (S, N)

        # kNN: K iterative first-occurrence argmins -> masks only (gather batched below).
        masks = []
        for _ in range(K):
            minval = jnp.min(sqr, axis=-1, keepdims=True)                     # (S, 1)
            idxm = jnp.min(jnp.where(sqr <= minval, iota_lane, N),
                           axis=-1, keepdims=True)                            # (S, 1)
            sel = iota_lane == idxm                                           # (S, N)
            masks.append(sel.astype(f32))
            sqr = jnp.where(sel, BIG, sqr)

        # One batched MXU gather for the anchor features and all K neighbor rows.
        onehot_all = jnp.concatenate([anchor_oh] + masks, axis=0)             # ((K+1)S, N)
        gath_pts = jnp.dot(onehot_all, pts_b, preferred_element_type=f32)     # ((K+1)S, D)
        gath_xyz = jnp.dot(onehot_all, xyz_b, preferred_element_type=f32)     # ((K+1)S, 3)
        anchor_pts = gath_pts[:S]                                             # (S, D)

        # Anchor normalization: mean = anchor, unbiased std over all S*K*Cg elements.
        y_pts = [gath_pts[(k + 1) * S:(k + 2) * S] - anchor_pts for k in range(K)]
        y_xyz = [gath_xyz[(k + 1) * S:(k + 2) * S] - nxyz for k in range(K)]
        tot = (sum(jnp.sum(yp) for yp in y_pts) + sum(jnp.sum(yx) for yx in y_xyz))
        mu = tot / n_el
        ss = (sum(jnp.sum((yp - mu) ** 2) for yp in y_pts)
              + sum(jnp.sum((yx - mu) ** 2) for yx in y_xyz))
        std = jnp.sqrt(ss / (n_el - 1))                  # torch.std default: unbiased
        inv = 1.0 / (std + 1e-5)

        # Fold 1/std into alpha; hoist all broadcasts out of the K loop.
        a_p = jnp.broadcast_to(alpha[:, :D] * inv, (S, D))
        a_x = jnp.broadcast_to(alpha[:, D:] * inv, (S, 3))
        b_p = jnp.broadcast_to(beta[:, :D], (S, D))
        b_x = jnp.broadcast_to(beta[:, D:], (S, 3))

        new_xyz_ref[j] = nxyz
        # Stream every piece straight into the output block at static lane offsets
        # (no (S, K*Cout) concatenated slab kept live).
        for k in range(K):
            off = k * Cout
            new_pts_ref[j, :, off:off + D] = a_p * y_pts[k] + b_p
            new_pts_ref[j, :, off + D:off + D + 3] = a_x * y_xyz[k] + b_x
            new_pts_ref[j, :, off + D + 3:off + Cout] = anchor_pts


def _vmem_limit_bytes(chains, N, D, S, K):
    Cg = D + 3
    Cout = 2 * D + 3
    fl = 4
    io = 2 * chains * fl * (N * (3 + 3 + D) + S * (3 + K * Cout))     # double-buffered blocks
    work = chains * fl * ((K + 3) * S * N + 2 * (K + 1) * S * Cg + 4 * N + S * K * Cout)
    est = 2 * (io + work)
    # TODO(synk): on v7x (64 MiB physical VMEM) prefer S-tiling the grouping phase
    # over raising this limit for very large S/K/D.
    return int(min(max(est, 32 * 1024 * 1024), 96 * 1024 * 1024))


def local_grouper(xyz, points, alpha, beta, farthest_init, *, groups, kneighbors,
                  chains=None):
    B, N, _ = xyz.shape
    D = points.shape[-1]
    Cg = D + 3
    Cout = 2 * D + 3
    if chains is None:
        chains = 2 if B % 2 == 0 else 1                  # interleaved FPS chains per step
    assert B % chains == 0

    xyz_t = jnp.transpose(xyz, (0, 2, 1))                # (B, 3, N) lane-major for FPS
    alpha2 = jnp.asarray(alpha, jnp.float32).reshape(1, Cg)
    beta2 = jnp.asarray(beta, jnp.float32).reshape(1, Cg)

    kernel = functools.partial(_local_grouper_kernel, npoint=groups,
                               kneighbors=kneighbors, dim=D, chains=chains)

    grid_spec = pltpu.PrefetchScalarGridSpec(
        num_scalar_prefetch=1,                           # farthest_init -> SMEM
        grid=(B // chains,),
        in_specs=[
            pl.BlockSpec((chains, 3, N), lambda b, finit: (b, 0, 0)),
            pl.BlockSpec((chains, N, 3), lambda b, finit: (b, 0, 0)),
            pl.BlockSpec((chains, N, D), lambda b, finit: (b, 0, 0)),
            pl.BlockSpec((1, Cg), lambda b, finit: (0, 0)),
            pl.BlockSpec((1, Cg), lambda b, finit: (0, 0)),
        ],
        out_specs=[
            pl.BlockSpec((chains, groups, 3), lambda b, finit: (b, 0, 0)),
            pl.BlockSpec((chains, groups, kneighbors * Cout), lambda b, finit: (b, 0, 0)),
        ],
    )

    new_xyz, new_pts_flat = pl.pallas_call(
        kernel,
        grid_spec=grid_spec,
        out_shape=(
            jax.ShapeDtypeStruct((B, groups, 3), jnp.float32),
            jax.ShapeDtypeStruct((B, groups, kneighbors * Cout), jnp.float32),
        ),
        compiler_params=pltpu.CompilerParams(
            dimension_semantics=("parallel",),           # independent batch blocks
            vmem_limit_bytes=_vmem_limit_bytes(chains, N, D, groups, kneighbors)),
    )(farthest_init, xyz_t, xyz, points, alpha2, beta2)

    # contiguous (free) reshape back to the module's output layout
    return new_xyz, new_pts_flat.reshape(B, groups, kneighbors, Cout)


def _reference_numpy(xyz, points, alpha, beta, finit, S, K):
    """Pure-numpy reference of LocalGrouper.forward (anchor normalize, use_xyz=True)."""
    xyz = np.asarray(xyz, dtype=np.float32)
    points = np.asarray(points, dtype=np.float32)
    alpha = np.asarray(alpha, dtype=np.float32).reshape(-1)
    beta = np.asarray(beta, dtype=np.float32).reshape(-1)
    finit = np.asarray(finit)
    B, N, _ = xyz.shape
    D = points.shape[-1]
    Cout = 2 * D + 3
    new_xyz = np.zeros((B, S, 3), np.float32)
    new_pts = np.zeros((B, S, K, Cout), np.float32)
    for b in range(B):
        dist = np.full((N,), 1e10, np.float32)
        far = int(finit[b])
        idxs = np.zeros((S,), np.int64)
        for i in range(S):
            idxs[i] = far
            c = xyz[b, far]
            d = np.sum((xyz[b] - c) ** 2, axis=-1)
            dist = np.minimum(dist, d)
            far = int(np.argmax(dist))
        a_xyz = xyz[b, idxs]                                    # (S, 3)
        a_pts = points[b, idxs]                                 # (S, D)
        sqr = np.sum((a_xyz[:, None, :] - xyz[b][None, :, :]) ** 2, axis=-1)
        nbr = np.argsort(sqr, axis=-1, kind="stable")[:, :K]    # ascending distance
        g_xyz = xyz[b][nbr]                                     # (S, K, 3)
        g_pts = points[b][nbr]                                  # (S, K, D)
        grouped = np.concatenate([g_pts, g_xyz], axis=-1)       # (S, K, D+3)
        mean = np.concatenate([a_pts, a_xyz], axis=-1)[:, None, :]
        z = grouped - mean
        std = np.std(z.reshape(-1), ddof=1)
        gz = alpha * (z / (std + 1e-5)) + beta
        rep = np.repeat(a_pts[:, None, :], K, axis=1)
        new_xyz[b] = a_xyz
        new_pts[b] = np.concatenate([gz, rep], axis=-1)
    return new_xyz, new_pts


if __name__ == "__main__":
    key = jax.random.PRNGKey(0)
    B, N, D = 2, 16, 4            # channel = 4
    groups, kneighbors = 8, 4     # S = 8, K = 4
    k1, k2, k3, k4, k5 = jax.random.split(key, 5)
    xyz = jax.random.normal(k1, (B, N, 3), dtype=jnp.float32)
    points = jax.random.normal(k2, (B, N, D), dtype=jnp.float32)
    # torch.randint FPS seed -> deterministic int32 seed, passed via scalar prefetch
    farthest_init = jax.random.randint(k3, (B,), 0, N, dtype=jnp.int32)
    # module params (init is ones/zeros; perturb to exercise the affine path)
    alpha = (1.0 + 0.05 * jax.random.normal(k4, (1, 1, 1, D + 3))).astype(jnp.float32)
    beta = (0.05 * jax.random.normal(k5, (1, 1, 1, D + 3))).astype(jnp.float32)

    new_xyz, new_points = local_grouper(xyz, points, alpha, beta, farthest_init,
                                        groups=groups, kneighbors=kneighbors)
    jax.block_until_ready((new_xyz, new_points))

    assert new_xyz.shape == (B, groups, 3)
    assert new_points.shape == (B, groups, kneighbors, 2 * D + 3)
    assert bool(jnp.all(jnp.isfinite(new_xyz)))
    assert bool(jnp.all(jnp.isfinite(new_points)))

    ref_xyz, ref_pts = _reference_numpy(xyz, points, alpha, beta, farthest_init,
                                        groups, kneighbors)
    # anchors are gathered exactly (VPU masked sum) -> near bit-exact
    np.testing.assert_allclose(np.asarray(new_xyz), ref_xyz, rtol=0.0, atol=1e-5)
    # grouped/normalized features go through MXU one-hot gathers -> loose tolerance
    np.testing.assert_allclose(np.asarray(new_points), ref_pts, rtol=3e-2, atol=3e-2)
    print("KERNEL_OK")
</pallas_src>

<mosaic_0001>
module attributes {stable_mosaic.version = 11 : i64} {
  func.func @_local_grouper_kernel(%arg0: i32, %arg1: memref<2xi32, #tpu.memory_space<smem>>, %arg2: memref<2x3x16xf32, #tpu.memory_space<vmem>>, %arg3: memref<2x16x3xf32, #tpu.memory_space<vmem>>, %arg4: memref<2x16x4xf32, #tpu.memory_space<vmem>>, %arg5: memref<1x7xf32, #tpu.memory_space<vmem>>, %arg6: memref<1x7xf32, #tpu.memory_space<vmem>>, %arg7: memref<2x8x3xf32, #tpu.memory_space<vmem>>, %arg8: memref<2x8x44xf32, #tpu.memory_space<vmem>>) attributes {dimension_semantics = [#tpu.dimension_semantics<parallel>], iteration_bounds = array<i64: 1>, scalar_prefetch = 1 : i64, scratch_operands = 0 : i64, tpu.core_type = #tpu.core_type<tc>, window_params = [{transform_indices = @transform_0, window_bounds = array<i64: 2, 3, 16>}, {transform_indices = @transform_1, window_bounds = array<i64: 2, 16, 3>}, {transform_indices = @transform_2, window_bounds = array<i64: 2, 16, 4>}, {pipeline_mode = #tpu.pipeline_mode<synchronous>, transform_indices = @transform_3, window_bounds = array<i64: 1, 7>}, {pipeline_mode = #tpu.pipeline_mode<synchronous>, transform_indices = @transform_4, window_bounds = array<i64: 1, 7>}, {transform_indices = @transform_5, window_bounds = array<i64: 2, 8, 3>}, {transform_indices = @transform_6, window_bounds = array<i64: 2, 8, 44>}]} {
    %c0 = arith.constant 0 : index
    %c0_0 = arith.constant 0 : index
    %c0_1 = arith.constant 0 : index
    %0 = vector.load %arg2[%c0, %c0_0, %c0_1] : memref<2x3x16xf32, #tpu.memory_space<vmem>>, vector<2x3x16xf32>
    %1 = tpu.iota {dimensions = array<i32: 1>} : vector<1x16xi32>
    %2 = arith.sitofp %1 : vector<1x16xi32> to vector<1x16xf32>
    %3 = tpu.iota {dimensions = array<i32: 2>} : vector<1x1x16xi32>
    %4 = tpu.iota {dimensions = array<i32: 1>} : vector<1x8xi32>
    %5 = tpu.iota {dimensions = array<i32: 0>} : vector<2x1xi32>
    %c0_i32 = arith.constant 0 : i32
    %6 = vector.broadcast %c0_i32 : i32 to vector<2x1xi32>
    %c0_i32_2 = arith.constant 0 : i32
    %7 = vector.broadcast %c0_i32_2 : i32 to vector<2x1xi32>
    %8 = arith.cmpi eq, %5, %7 : vector<2x1xi32>
    %c2_i32 = arith.constant 2 : i32
    %9 = arith.muli %arg0, %c2_i32 : i32
    %c0_i32_3 = arith.constant 0 : i32
    %10 = arith.addi %9, %c0_i32_3 : i32
    %11 = arith.index_cast %10 : i32 to index
    %12 = memref.load %arg1[%11] : memref<2xi32, #tpu.memory_space<smem>>
    %13 = vector.broadcast %12 : i32 to vector<2x1xi32>
    %14 = arith.select %8, %13, %6 : vector<2x1xi1>, vector<2x1xi32>
    %c1_i32 = arith.constant 1 : i32
    %15 = vector.broadcast %c1_i32 : i32 to vector<2x1xi32>
    %16 = arith.cmpi eq, %5, %15 : vector<2x1xi32>
    %c2_i32_4 = arith.constant 2 : i32
    %17 = arith.muli %arg0, %c2_i32_4 : i32
    %c1_i32_5 = arith.constant 1 : i32
    %18 = arith.addi %17, %c1_i32_5 : i32
    %19 = arith.index_cast %18 : i32 to index
    %20 = memref.load %arg1[%19] : memref<2xi32, #tpu.memory_space<smem>>
    %21 = vector.broadcast %20 : i32 to vector<2x1xi32>
    %22 = arith.select %16, %21, %14 : vector<2x1xi1>, vector<2x1xi32>
    %cst = arith.constant 1.000000e+10 : f32
    %23 = vector.broadcast %cst : f32 to vector<2x16xf32>
    %cst_6 = arith.constant 0.000000e+00 : f32
    %24 = vector.broadcast %cst_6 : f32 to vector<2x8xf32>
    %c0_i32_7 = arith.constant 0 : i32
    %c8_i32 = arith.constant 8 : i32
    %25 = arith.addi %c0_i32_7, %c8_i32 : i32
    %c1_i32_8 = arith.constant 1 : i32
    %26:3 = scf.for %arg9 = %c0_i32_7 to %25 step %c1_i32_8 iter_args(%arg10 = %23, %arg11 = %22, %arg12 = %24) -> (vector<2x16xf32>, vector<2x1xi32>, vector<2x8xf32>)  : i32 {
      %656 = vector.broadcast %arg9 : i32 to vector<1x8xi32>
      %657 = arith.cmpi eq, %4, %656 : vector<1x8xi32>
      %658 = arith.sitofp %arg11 : vector<2x1xi32> to vector<2x1xf32>
      %659 = vector.shape_cast %657 : vector<1x8xi1> to vector<1x8xi1>
      %660 = vector.broadcast %659 : vector<1x8xi1> to vector<2x8xi1>
      %661 = vector.shape_cast %658 : vector<2x1xf32> to vector<2x1xf32>
      %662 = vector.broadcast %661 : vector<2x1xf32> to vector<2x8xf32>
      %663 = arith.select %660, %662, %arg12 : vector<2x8xi1>, vector<2x8xf32>
      %664 = vector.shape_cast %arg11 : vector<2x1xi32> to vector<2x1x1xi32>
      %665 = vector.broadcast %3 : vector<1x1x16xi32> to vector<2x1x16xi32>
      %666 = vector.broadcast %664 : vector<2x1x1xi32> to vector<2x1x16xi32>
      %667 = arith.cmpi eq, %665, %666 : vector<2x1x16xi32>
      %668 = arith.extui %667 : vector<2x1x16xi1> to vector<2x1x16xi32>
      %669 = arith.sitofp %668 : vector<2x1x16xi32> to vector<2x1x16xf32>
      %670 = vector.broadcast %669 : vector<2x1x16xf32> to vector<2x3x16xf32>
      %671 = arith.mulf %0, %670 : vector<2x3x16xf32>
      %cst_179 = arith.constant dense<0.000000e+00> : vector<2x3xf32>
      %672 = vector.multi_reduction <add>, %671, %cst_179 [2] : vector<2x3x16xf32> to vector<2x3xf32>
      %673 = vector.shape_cast %672 : vector<2x3xf32> to vector<2x3x1xf32>
      %674 = vector.broadcast %673 : vector<2x3x1xf32> to vector<2x3x16xf32>
      %675 = arith.subf %0, %674 : vector<2x3x16xf32>
      %676 = arith.mulf %675, %675 : vector<2x3x16xf32>
      %cst_180 = arith.constant dense<0.000000e+00> : vector<2x16xf32>
      %677 = vector.multi_reduction <add>, %676, %cst_180 [1] : vector<2x3x16xf32> to vector<2x16xf32>
      %678 = arith.minimumf %arg10, %677 : vector<2x16xf32>
      %cst_181 = arith.constant dense<0xFF800000> : vector<2xf32>
      %679 = vector.multi_reduction <maximumf>, %678, %cst_181 [1] : vector<2x16xf32> to vector<2xf32>
      %680 = vector.shape_cast %679 : vector<2xf32> to vector<2x1xf32>
      %681 = vector.broadcast %680 : vector<2x1xf32> to vector<2x16xf32>
      %682 = arith.cmpf oge, %678, %681 : vector<2x16xf32>
      %c16_i32_182 = arith.constant 16 : i32
      %683 = vector.shape_cast %1 : vector<1x16xi32> to vector<1x16xi32>
      %684 = vector.broadcast %683 : vector<1x16xi32> to vector<2x16xi32>
      %685 = vector.broadcast %c16_i32_182 : i32 to vector<2x16xi32>
      %686 = arith.select %682, %684, %685 : vector<2x16xi1>, vector<2x16xi32>
      %cst_183 = arith.constant dense<2147483647> : vector<2xi32>
      %687 = vector.multi_reduction <minsi>, %686, %cst_183 [1] : vector<2x16xi32> to vector<2xi32>
      %688 = vector.shape_cast %687 : vector<2xi32> to vector<2x1xi32>
      scf.yield %678, %688, %663 : vector<2x16xf32>, vector<2x1xi32>, vector<2x8xf32>
    }
    %c8_i32_9 = arith.constant 8 : i32
    %27 = tpu.transpose %26#2, [1, 0] : vector<2x8xf32> -> vector<8x2xf32>
    %c0_10 = arith.constant 0 : index
    %c0_11 = arith.constant 0 : index
    %28 = vector.load %arg5[%c0_10, %c0_11] : memref<1x7xf32, #tpu.memory_space<vmem>>, vector<1x7xf32>
    %c0_12 = arith.constant 0 : index
    %c0_13 = arith.constant 0 : index
    %29 = vector.load %arg6[%c0_12, %c0_13] : memref<1x7xf32, #tpu.memory_space<vmem>>, vector<1x7xf32>
    %30 = vector.extract_strided_slice %0 {offsets = [0, 0, 0], sizes = [1, 3, 16], strides = [1, 1, 1]} : vector<2x3x16xf32> to vector<1x3x16xf32>
    %31 = vector.shape_cast %30 : vector<1x3x16xf32> to vector<3x16xf32>
    %c0_14 = arith.constant 0 : index
    %c0_15 = arith.constant 0 : index
    %c0_16 = arith.constant 0 : index
    %32 = vector.load %arg3[%c0_14, %c0_15, %c0_16] : memref<2x16x3xf32, #tpu.memory_space<vmem>>, vector<1x16x3xf32>
    %33 = vector.shape_cast %32 : vector<1x16x3xf32> to vector<16x3xf32>
    %c0_17 = arith.constant 0 : index
    %c0_18 = arith.constant 0 : index
    %c0_19 = arith.constant 0 : index
    %34 = vector.load %arg4[%c0_17, %c0_18, %c0_19] : memref<2x16x4xf32, #tpu.memory_space<vmem>>, vector<1x16x4xf32>
    %35 = vector.shape_cast %34 : vector<1x16x4xf32> to vector<16x4xf32>
    %36 = vector.extract_strided_slice %27 {offsets = [0, 0], sizes = [8, 1], strides = [1, 1]} : vector<8x2xf32> to vector<8x1xf32>
    %37 = vector.broadcast %2 : vector<1x16xf32> to vector<8x16xf32>
    %38 = vector.broadcast %36 : vector<8x1xf32> to vector<8x16xf32>
    %39 = arith.cmpf oeq, %37, %38 : vector<8x16xf32>
    %40 = arith.extui %39 : vector<8x16xi1> to vector<8x16xi32>
    %41 = arith.sitofp %40 : vector<8x16xi32> to vector<8x16xf32>
    %42 = vector.extract_strided_slice %31 {offsets = [0, 0], sizes = [1, 16], strides = [1, 1]} : vector<3x16xf32> to vector<1x16xf32>
    %43 = vector.broadcast %42 : vector<1x16xf32> to vector<8x16xf32>
    %44 = arith.mulf %41, %43 : vector<8x16xf32>
    %cst_20 = arith.constant dense<0.000000e+00> : vector<8xf32>
    %45 = vector.multi_reduction <add>, %44, %cst_20 [1] : vector<8x16xf32> to vector<8xf32>
    %46 = vector.shape_cast %45 : vector<8xf32> to vector<8x1xf32>
    %47 = vector.extract_strided_slice %31 {offsets = [1, 0], sizes = [1, 16], strides = [1, 1]} : vector<3x16xf32> to vector<1x16xf32>
    %48 = vector.broadcast %47 : vector<1x16xf32> to vector<8x16xf32>
    %49 = arith.mulf %41, %48 : vector<8x16xf32>
    %cst_21 = arith.constant dense<0.000000e+00> : vector<8xf32>
    %50 = vector.multi_reduction <add>, %49, %cst_21 [1] : vector<8x16xf32> to vector<8xf32>
    %51 = vector.shape_cast %50 : vector<8xf32> to vector<8x1xf32>
    %52 = vector.extract_strided_slice %31 {offsets = [2, 0], sizes = [1, 16], strides = [1, 1]} : vector<3x16xf32> to vector<1x16xf32>
    %53 = vector.broadcast %52 : vector<1x16xf32> to vector<8x16xf32>
    %54 = arith.mulf %41, %53 : vector<8x16xf32>
    %cst_22 = arith.constant dense<0.000000e+00> : vector<8xf32>
    %55 = vector.multi_reduction <add>, %54, %cst_22 [1] : vector<8x16xf32> to vector<8xf32>
    %56 = vector.shape_cast %55 : vector<8xf32> to vector<8x1xf32>
    %57 = tpu.concatenate %46, %51, %56 in 1 : vector<8x1xf32>, vector<8x1xf32>, vector<8x1xf32> -> vector<8x3xf32>
    %58 = vector.extract_strided_slice %31 {offsets = [0, 0], sizes = [1, 16], strides = [1, 1]} : vector<3x16xf32> to vector<1x16xf32>
    %59 = vector.broadcast %46 : vector<8x1xf32> to vector<8x16xf32>
    %60 = vector.broadcast %58 : vector<1x16xf32> to vector<8x16xf32>
    %61 = arith.subf %59, %60 : vector<8x16xf32>
    %62 = arith.mulf %61, %61 : vector<8x16xf32>
    %63 = vector.extract_strided_slice %31 {offsets = [1, 0], sizes = [1, 16], strides = [1, 1]} : vector<3x16xf32> to vector<1x16xf32>
    %64 = vector.broadcast %51 : vector<8x1xf32> to vector<8x16xf32>
    %65 = vector.broadcast %63 : vector<1x16xf32> to vector<8x16xf32>
    %66 = arith.subf %64, %65 : vector<8x16xf32>
    %67 = arith.mulf %66, %66 : vector<8x16xf32>
    %68 = arith.addf %62, %67 : vector<8x16xf32>
    %69 = vector.extract_strided_slice %31 {offsets = [2, 0], sizes = [1, 16], strides = [1, 1]} : vector<3x16xf32> to vector<1x16xf32>
    %70 = vector.broadcast %56 : vector<8x1xf32> to vector<8x16xf32>
    %71 = vector.broadcast %69 : vector<1x16xf32> to vector<8x16xf32>
    %72 = arith.subf %70, %71 : vector<8x16xf32>
    %73 = arith.mulf %72, %72 : vector<8x16xf32>
    %74 = arith.addf %68, %73 : vector<8x16xf32>
    %cst_23 = arith.constant dense<0x7F800000> : vector<8xf32>
    %75 = vector.multi_reduction <minimumf>, %74, %cst_23 [1] : vector<8x16xf32> to vector<8xf32>
    %76 = vector.shape_cast %75 : vector<8xf32> to vector<8x1xf32>
    %77 = vector.broadcast %76 : vector<8x1xf32> to vector<8x16xf32>
    %78 = arith.cmpf ole, %74, %77 : vector<8x16xf32>
    %c16_i32 = arith.constant 16 : i32
    %79 = vector.shape_cast %1 : vector<1x16xi32> to vector<1x16xi32>
    %80 = vector.broadcast %79 : vector<1x16xi32> to vector<8x16xi32>
    %81 = vector.broadcast %c16_i32 : i32 to vector<8x16xi32>
    %82 = arith.select %78, %80, %81 : vector<8x16xi1>, vector<8x16xi32>
    %cst_24 = arith.constant dense<2147483647> : vector<8xi32>
    %83 = vector.multi_reduction <minsi>, %82, %cst_24 [1] : vector<8x16xi32> to vector<8xi32>
    %84 = vector.shape_cast %83 : vector<8xi32> to vector<8x1xi32>
    %85 = vector.broadcast %1 : vector<1x16xi32> to vector<8x16xi32>
    %86 = vector.broadcast %84 : vector<8x1xi32> to vector<8x16xi32>
    %87 = arith.cmpi eq, %85, %86 : vector<8x16xi32>
    %88 = arith.extui %87 : vector<8x16xi1> to vector<8x16xi32>
    %89 = arith.sitofp %88 : vector<8x16xi32> to vector<8x16xf32>
    %cst_25 = arith.constant 1.000000e+30 : f32
    %90 = vector.broadcast %cst_25 : f32 to vector<8x16xf32>
    %91 = arith.select %87, %90, %74 : vector<8x16xi1>, vector<8x16xf32>
    %cst_26 = arith.constant dense<0x7F800000> : vector<8xf32>
    %92 = vector.multi_reduction <minimumf>, %91, %cst_26 [1] : vector<8x16xf32> to vector<8xf32>
    %93 = vector.shape_cast %92 : vector<8xf32> to vector<8x1xf32>
    %94 = vector.broadcast %93 : vector<8x1xf32> to vector<8x16xf32>
    %95 = arith.cmpf ole, %91, %94 : vector<8x16xf32>
    %c16_i32_27 = arith.constant 16 : i32
    %96 = vector.shape_cast %1 : vector<1x16xi32> to vector<1x16xi32>
    %97 = vector.broadcast %96 : vector<1x16xi32> to vector<8x16xi32>
    %98 = vector.broadcast %c16_i32_27 : i32 to vector<8x16xi32>
    %99 = arith.select %95, %97, %98 : vector<8x16xi1>, vector<8x16xi32>
    %cst_28 = arith.constant dense<2147483647> : vector<8xi32>
    %100 = vector.multi_reduction <minsi>, %99, %cst_28 [1] : vector<8x16xi32> to vector<8xi32>
    %101 = vector.shape_cast %100 : vector<8xi32> to vector<8x1xi32>
    %102 = vector.broadcast %1 : vector<1x16xi32> to vector<8x16xi32>
    %103 = vector.broadcast %101 : vector<8x1xi32> to vector<8x16xi32>
    %104 = arith.cmpi eq, %102, %103 : vector<8x16xi32>
    %105 = arith.extui %104 : vector<8x16xi1> to vector<8x16xi32>
    %106 = arith.sitofp %105 : vector<8x16xi32> to vector<8x16xf32>
    %cst_29 = arith.constant 1.000000e+30 : f32
    %107 = vector.broadcast %cst_29 : f32 to vector<8x16xf32>
    %108 = arith.select %104, %107, %91 : vector<8x16xi1>, vector<8x16xf32>
    %cst_30 = arith.constant dense<0x7F800000> : vector<8xf32>
    %109 = vector.multi_reduction <minimumf>, %108, %cst_30 [1] : vector<8x16xf32> to vector<8xf32>
    %110 = vector.shape_cast %109 : vector<8xf32> to vector<8x1xf32>
    %111 = vector.broadcast %110 : vector<8x1xf32> to vector<8x16xf32>
    %112 = arith.cmpf ole, %108, %111 : vector<8x16xf32>
    %c16_i32_31 = arith.constant 16 : i32
    %113 = vector.shape_cast %1 : vector<1x16xi32> to vector<1x16xi32>
    %114 = vector.broadcast %113 : vector<1x16xi32> to vector<8x16xi32>
    %115 = vector.broadcast %c16_i32_31 : i32 to vector<8x16xi32>
    %116 = arith.select %112, %114, %115 : vector<8x16xi1>, vector<8x16xi32>
    %cst_32 = arith.constant dense<2147483647> : vector<8xi32>
    %117 = vector.multi_reduction <minsi>, %116, %cst_32 [1] : vector<8x16xi32> to vector<8xi32>
    %118 = vector.shape_cast %117 : vector<8xi32> to vector<8x1xi32>
    %119 = vector.broadcast %1 : vector<1x16xi32> to vector<8x16xi32>
    %120 = vector.broadcast %118 : vector<8x1xi32> to vector<8x16xi32>
    %121 = arith.cmpi eq, %119, %120 : vector<8x16xi32>
    %122 = arith.extui %121 : vector<8x16xi1> to vector<8x16xi32>
    %123 = arith.sitofp %122 : vector<8x16xi32> to vector<8x16xf32>
    %cst_33 = arith.constant 1.000000e+30 : f32
    %124 = vector.broadcast %cst_33 : f32 to vector<8x16xf32>
    %125 = arith.select %121, %124, %108 : vector<8x16xi1>, vector<8x16xf32>
    %cst_34 = arith.constant dense<0x7F800000> : vector<8xf32>
    %126 = vector.multi_reduction <minimumf>, %125, %cst_34 [1] : vector<8x16xf32> to vector<8xf32>
    %127 = vector.shape_cast %126 : vector<8xf32> to vector<8x1xf32>
    %128 = vector.broadcast %127 : vector<8x1xf32> to vector<8x16xf32>
    %129 = arith.cmpf ole, %125, %128 : vector<8x16xf32>
    %c16_i32_35 = arith.constant 16 : i32
    %130 = vector.shape_cast %1 : vector<1x16xi32> to vector<1x16xi32>
    %131 = vector.broadcast %130 : vector<1x16xi32> to vector<8x16xi32>
    %132 = vector.broadcast %c16_i32_35 : i32 to vector<8x16xi32>
    %133 = arith.select %129, %131, %132 : vector<8x16xi1>, vector<8x16xi32>
    %cst_36 = arith.constant dense<2147483647> : vector<8xi32>
    %134 = vector.multi_reduction <minsi>, %133, %cst_36 [1] : vector<8x16xi32> to vector<8xi32>
    %135 = vector.shape_cast %134 : vector<8xi32> to vector<8x1xi32>
    %136 = vector.broadcast %1 : vector<1x16xi32> to vector<8x16xi32>
    %137 = vector.broadcast %135 : vector<8x1xi32> to vector<8x16xi32>
    %138 = arith.cmpi eq, %136, %137 : vector<8x16xi32>
    %139 = arith.extui %138 : vector<8x16xi1> to vector<8x16xi32>
    %140 = arith.sitofp %139 : vector<8x16xi32> to vector<8x16xf32>
    %141 = tpu.concatenate %41, %89, %106, %123, %140 in 0 : vector<8x16xf32>, vector<8x16xf32>, vector<8x16xf32>, vector<8x16xf32>, vector<8x16xf32> -> vector<40x16xf32>
    %cst_37 = arith.constant dense<0.000000e+00> : vector<40x4xf32>
    %142 = tpu.matmul %141, %35, %cst_37 {dimension_numbers = #tpu.dot_dimension_numbers<[1], [0], [0], [1], [0, 0, 1, 1], [], []>} : vector<40x16xf32>, vector<16x4xf32>, vector<40x4xf32> -> vector<40x4xf32>
    %cst_38 = arith.constant dense<0.000000e+00> : vector<40x3xf32>
    %143 = tpu.matmul %141, %33, %cst_38 {dimension_numbers = #tpu.dot_dimension_numbers<[1], [0], [0], [1], [0, 0, 1, 1], [], []>} : vector<40x16xf32>, vector<16x3xf32>, vector<40x3xf32> -> vector<40x3xf32>
    %144 = vector.extract_strided_slice %142 {offsets = [0, 0], sizes = [8, 4], strides = [1, 1]} : vector<40x4xf32> to vector<8x4xf32>
    %145 = vector.extract_strided_slice %142 {offsets = [8, 0], sizes = [8, 4], strides = [1, 1]} : vector<40x4xf32> to vector<8x4xf32>
    %146 = arith.subf %145, %144 : vector<8x4xf32>
    %147 = vector.extract_strided_slice %142 {offsets = [16, 0], sizes = [8, 4], strides = [1, 1]} : vector<40x4xf32> to vector<8x4xf32>
    %148 = arith.subf %147, %144 : vector<8x4xf32>
    %149 = vector.extract_strided_slice %142 {offsets = [24, 0], sizes = [8, 4], strides = [1, 1]} : vector<40x4xf32> to vector<8x4xf32>
    %150 = arith.subf %149, %144 : vector<8x4xf32>
    %151 = vector.extract_strided_slice %142 {offsets = [32, 0], sizes = [8, 4], strides = [1, 1]} : vector<40x4xf32> to vector<8x4xf32>
    %152 = arith.subf %151, %144 : vector<8x4xf32>
    %153 = vector.extract_strided_slice %143 {offsets = [8, 0], sizes = [8, 3], strides = [1, 1]} : vector<40x3xf32> to vector<8x3xf32>
    %154 = arith.subf %153, %57 : vector<8x3xf32>
    %155 = vector.extract_strided_slice %143 {offsets = [16, 0], sizes = [8, 3], strides = [1, 1]} : vector<40x3xf32> to vector<8x3xf32>
    %156 = arith.subf %155, %57 : vector<8x3xf32>
    %157 = vector.extract_strided_slice %143 {offsets = [24, 0], sizes = [8, 3], strides = [1, 1]} : vector<40x3xf32> to vector<8x3xf32>
    %158 = arith.subf %157, %57 : vector<8x3xf32>
    %159 = vector.extract_strided_slice %143 {offsets = [32, 0], sizes = [8, 3], strides = [1, 1]} : vector<40x3xf32> to vector<8x3xf32>
    %160 = arith.subf %159, %57 : vector<8x3xf32>
    %161 = vector.shape_cast %146 : vector<8x4xf32> to vector<1x8x4xf32>
    %cst_39 = arith.constant dense<0.000000e+00> : vector<1xf32>
    %162 = vector.multi_reduction <add>, %161, %cst_39 [1, 2] : vector<1x8x4xf32> to vector<1xf32>
    %163 = vector.shape_cast %162 : vector<1xf32> to vector<1x1x1xf32>
    %164 = vector.extract %163[0, 0, 0] : f32 from vector<1x1x1xf32>
    %cst_40 = arith.constant 0.000000e+00 : f32
    %165 = arith.addf %cst_40, %164 : f32
    %166 = vector.shape_cast %148 : vector<8x4xf32> to vector<1x8x4xf32>
    %cst_41 = arith.constant dense<0.000000e+00> : vector<1xf32>
    %167 = vector.multi_reduction <add>, %166, %cst_41 [1, 2] : vector<1x8x4xf32> to vector<1xf32>
    %168 = vector.shape_cast %167 : vector<1xf32> to vector<1x1x1xf32>
    %169 = vector.extract %168[0, 0, 0] : f32 from vector<1x1x1xf32>
    %170 = arith.addf %165, %169 : f32
    %171 = vector.shape_cast %150 : vector<8x4xf32> to vector<1x8x4xf32>
    %cst_42 = arith.constant dense<0.000000e+00> : vector<1xf32>
    %172 = vector.multi_reduction <add>, %171, %cst_42 [1, 2] : vector<1x8x4xf32> to vector<1xf32>
    %173 = vector.shape_cast %172 : vector<1xf32> to vector<1x1x1xf32>
    %174 = vector.extract %173[0, 0, 0] : f32 from vector<1x1x1xf32>
    %175 = arith.addf %170, %174 : f32
    %176 = vector.shape_cast %152 : vector<8x4xf32> to vector<1x8x4xf32>
    %cst_43 = arith.constant dense<0.000000e+00> : vector<1xf32>
    %177 = vector.multi_reduction <add>, %176, %cst_43 [1, 2] : vector<1x8x4xf32> to vector<1xf32>
    %178 = vector.shape_cast %177 : vector<1xf32> to vector<1x1x1xf32>
    %179 = vector.extract %178[0, 0, 0] : f32 from vector<1x1x1xf32>
    %180 = arith.addf %175, %179 : f32
    %181 = vector.shape_cast %154 : vector<8x3xf32> to vector<1x8x3xf32>
    %cst_44 = arith.constant dense<0.000000e+00> : vector<1xf32>
    %182 = vector.multi_reduction <add>, %181, %cst_44 [1, 2] : vector<1x8x3xf32> to vector<1xf32>
    %183 = vector.shape_cast %182 : vector<1xf32> to vector<1x1x1xf32>
    %184 = vector.extract %183[0, 0, 0] : f32 from vector<1x1x1xf32>
    %cst_45 = arith.constant 0.000000e+00 : f32
    %185 = arith.addf %cst_45, %184 : f32
    %186 = vector.shape_cast %156 : vector<8x3xf32> to vector<1x8x3xf32>
    %cst_46 = arith.constant dense<0.000000e+00> : vector<1xf32>
    %187 = vector.multi_reduction <add>, %186, %cst_46 [1, 2] : vector<1x8x3xf32> to vector<1xf32>
    %188 = vector.shape_cast %187 : vector<1xf32> to vector<1x1x1xf32>
    %189 = vector.extract %188[0, 0, 0] : f32 from vector<1x1x1xf32>
    %190 = arith.addf %185, %189 : f32
    %191 = vector.shape_cast %158 : vector<8x3xf32> to vector<1x8x3xf32>
    %cst_47 = arith.constant dense<0.000000e+00> : vector<1xf32>
    %192 = vector.multi_reduction <add>, %191, %cst_47 [1, 2] : vector<1x8x3xf32> to vector<1xf32>
    %193 = vector.shape_cast %192 : vector<1xf32> to vector<1x1x1xf32>
    %194 = vector.extract %193[0, 0, 0] : f32 from vector<1x1x1xf32>
    %195 = arith.addf %190, %194 : f32
    %196 = vector.shape_cast %160 : vector<8x3xf32> to vector<1x8x3xf32>
    %cst_48 = arith.constant dense<0.000000e+00> : vector<1xf32>
    %197 = vector.multi_reduction <add>, %196, %cst_48 [1, 2] : vector<1x8x3xf32> to vector<1xf32>
    %198 = vector.shape_cast %197 : vector<1xf32> to vector<1x1x1xf32>
    %199 = vector.extract %198[0, 0, 0] : f32 from vector<1x1x1xf32>
    %200 = arith.addf %195, %199 : f32
    %201 = arith.addf %180, %200 : f32
    %cst_49 = arith.constant 2.240000e+02 : f32
    %202 = arith.divf %201, %cst_49 : f32
    %203 = vector.broadcast %202 : f32 to vector<8x4xf32>
    %204 = arith.subf %146, %203 : vector<8x4xf32>
    %205 = arith.mulf %204, %204 : vector<8x4xf32>
    %206 = vector.shape_cast %205 : vector<8x4xf32> to vector<1x8x4xf32>
    %cst_50 = arith.constant dense<0.000000e+00> : vector<1xf32>
    %207 = vector.multi_reduction <add>, %206, %cst_50 [1, 2] : vector<1x8x4xf32> to vector<1xf32>
    %208 = vector.shape_cast %207 : vector<1xf32> to vector<1x1x1xf32>
    %209 = vector.extract %208[0, 0, 0] : f32 from vector<1x1x1xf32>
    %cst_51 = arith.constant 0.000000e+00 : f32
    %210 = arith.addf %cst_51, %209 : f32
    %211 = vector.broadcast %202 : f32 to vector<8x4xf32>
    %212 = arith.subf %148, %211 : vector<8x4xf32>
    %213 = arith.mulf %212, %212 : vector<8x4xf32>
    %214 = vector.shape_cast %213 : vector<8x4xf32> to vector<1x8x4xf32>
    %cst_52 = arith.constant dense<0.000000e+00> : vector<1xf32>
    %215 = vector.multi_reduction <add>, %214, %cst_52 [1, 2] : vector<1x8x4xf32> to vector<1xf32>
    %216 = vector.shape_cast %215 : vector<1xf32> to vector<1x1x1xf32>
    %217 = vector.extract %216[0, 0, 0] : f32 from vector<1x1x1xf32>
    %218 = arith.addf %210, %217 : f32
    %219 = vector.broadcast %202 : f32 to vector<8x4xf32>
    %220 = arith.subf %150, %219 : vector<8x4xf32>
    %221 = arith.mulf %220, %220 : vector<8x4xf32>
    %222 = vector.shape_cast %221 : vector<8x4xf32> to vector<1x8x4xf32>
    %cst_53 = arith.constant dense<0.000000e+00> : vector<1xf32>
    %223 = vector.multi_reduction <add>, %222, %cst_53 [1, 2] : vector<1x8x4xf32> to vector<1xf32>
    %224 = vector.shape_cast %223 : vector<1xf32> to vector<1x1x1xf32>
    %225 = vector.extract %224[0, 0, 0] : f32 from vector<1x1x1xf32>
    %226 = arith.addf %218, %225 : f32
    %227 = vector.broadcast %202 : f32 to vector<8x4xf32>
    %228 = arith.subf %152, %227 : vector<8x4xf32>
    %229 = arith.mulf %228, %228 : vector<8x4xf32>
    %230 = vector.shape_cast %229 : vector<8x4xf32> to vector<1x8x4xf32>
    %cst_54 = arith.constant dense<0.000000e+00> : vector<1xf32>
    %231 = vector.multi_reduction <add>, %230, %cst_54 [1, 2] : vector<1x8x4xf32> to vector<1xf32>
    %232 = vector.shape_cast %231 : vector<1xf32> to vector<1x1x1xf32>
    %233 = vector.extract %232[0, 0, 0] : f32 from vector<1x1x1xf32>
    %234 = arith.addf %226, %233 : f32
    %235 = vector.broadcast %202 : f32 to vector<8x3xf32>
    %236 = arith.subf %154, %235 : vector<8x3xf32>
    %237 = arith.mulf %236, %236 : vector<8x3xf32>
    %238 = vector.shape_cast %237 : vector<8x3xf32> to vector<1x8x3xf32>
    %cst_55 = arith.constant dense<0.000000e+00> : vector<1xf32>
    %239 = vector.multi_reduction <add>, %238, %cst_55 [1, 2] : vector<1x8x3xf32> to vector<1xf32>
    %240 = vector.shape_cast %239 : vector<1xf32> to vector<1x1x1xf32>
    %241 = vector.extract %240[0, 0, 0] : f32 from vector<1x1x1xf32>
    %cst_56 = arith.constant 0.000000e+00 : f32
    %242 = arith.addf %cst_56, %241 : f32
    %243 = vector.broadcast %202 : f32 to vector<8x3xf32>
    %244 = arith.subf %156, %243 : vector<8x3xf32>
    %245 = arith.mulf %244, %244 : vector<8x3xf32>
    %246 = vector.shape_cast %245 : vector<8x3xf32> to vector<1x8x3xf32>
    %cst_57 = arith.constant dense<0.000000e+00> : vector<1xf32>
    %247 = vector.multi_reduction <add>, %246, %cst_57 [1, 2] : vector<1x8x3xf32> to vector<1xf32>
    %248 = vector.shape_cast %247 : vector<1xf32> to vector<1x1x1xf32>
    %249 = vector.extract %248[0, 0, 0] : f32 from vector<1x1x1xf32>
    %250 = arith.addf %242, %249 : f32
    %251 = vector.broadcast %202 : f32 to vector<8x3xf32>
    %252 = arith.subf %158, %251 : vector<8x3xf32>
    %253 = arith.mulf %252, %252 : vector<8x3xf32>
    %254 = vector.shape_cast %253 : vector<8x3xf32> to vector<1x8x3xf32>
    %cst_58 = arith.constant dense<0.000000e+00> : vector<1xf32>
    %255 = vector.multi_reduction <add>, %254, %cst_58 [1, 2] : vector<1x8x3xf32> to vector<1xf32>
    %256 = vector.shape_cast %255 : vector<1xf32> to vector<1x1x1xf32>
    %257 = vector.extract %256[0, 0, 0] : f32 from vector<1x1x1xf32>
    %258 = arith.addf %250, %257 : f32
    %259 = vector.broadcast %202 : f32 to vector<8x3xf32>
    %260 = arith.subf %160, %259 : vector<8x3xf32>
    %261 = arith.mulf %260, %260 : vector<8x3xf32>
    %262 = vector.shape_cast %261 : vector<8x3xf32> to vector<1x8x3xf32>
    %cst_59 = arith.constant dense<0.000000e+00> : vector<1xf32>
    %263 = vector.multi_reduction <add>, %262, %cst_59 [1, 2] : vector<1x8x3xf32> to vector<1xf32>
    %264 = vector.shape_cast %263 : vector<1xf32> to vector<1x1x1xf32>
    %265 = vector.extract %264[0, 0, 0] : f32 from vector<1x1x1xf32>
    %266 = arith.addf %258, %265 : f32
    %267 = arith.addf %234, %266 : f32
    %cst_60 = arith.constant 2.230000e+02 : f32
    %268 = arith.divf %267, %cst_60 : f32
    %269 = math.sqrt %268 : f32
    %cst_61 = arith.constant 9.99999974E-6 : f32
    %270 = arith.addf %269, %cst_61 : f32
    %cst_62 = arith.constant 1.000000e+00 : f32
    %271 = arith.divf %cst_62, %270 : f32
    %272 = vector.extract_strided_slice %28 {offsets = [0, 0], sizes = [1, 4], strides = [1, 1]} : vector<1x7xf32> to vector<1x4xf32>
    %273 = vector.broadcast %271 : f32 to vector<1x4xf32>
    %274 = arith.mulf %272, %273 : vector<1x4xf32>
    %275 = vector.shape_cast %274 : vector<1x4xf32> to vector<1x4xf32>
    %276 = vector.broadcast %275 : vector<1x4xf32> to vector<8x4xf32>
    %277 = vector.extract_strided_slice %28 {offsets = [0, 4], sizes = [1, 3], strides = [1, 1]} : vector<1x7xf32> to vector<1x3xf32>
    %278 = vector.broadcast %271 : f32 to vector<1x3xf32>
    %279 = arith.mulf %277, %278 : vector<1x3xf32>
    %280 = vector.shape_cast %279 : vector<1x3xf32> to vector<1x3xf32>
    %281 = vector.broadcast %280 : vector<1x3xf32> to vector<8x3xf32>
    %282 = vector.extract_strided_slice %29 {offsets = [0, 0], sizes = [1, 4], strides = [1, 1]} : vector<1x7xf32> to vector<1x4xf32>
    %283 = vector.shape_cast %282 : vector<1x4xf32> to vector<1x4xf32>
    %284 = vector.broadcast %283 : vector<1x4xf32> to vector<8x4xf32>
    %285 = vector.extract_strided_slice %29 {offsets = [0, 4], sizes = [1, 3], strides = [1, 1]} : vector<1x7xf32> to vector<1x3xf32>
    %286 = vector.shape_cast %285 : vector<1x3xf32> to vector<1x3xf32>
    %287 = vector.broadcast %286 : vector<1x3xf32> to vector<8x3xf32>
    %c0_63 = arith.constant 0 : index
    %c0_64 = arith.constant 0 : index
    %c0_65 = arith.constant 0 : index
    %288 = vector.load %arg7[%c0_63, %c0_64, %c0_65] : memref<2x8x3xf32, #tpu.memory_space<vmem>>, vector<1x8x3xf32>
    %289 = vector.shape_cast %288 : vector<1x8x3xf32> to vector<8x3xf32>
    %290 = vector.shape_cast %57 : vector<8x3xf32> to vector<1x8x3xf32>
    tpu.vector_store %arg7[%c0_63, %c0_64, %c0_65], %290 {strides = array<i32>} : memref<2x8x3xf32, #tpu.memory_space<vmem>>, vector<1x8x3xf32>,
    %291 = arith.mulf %276, %146 : vector<8x4xf32>
    %292 = arith.addf %291, %284 : vector<8x4xf32>
    %c0_66 = arith.constant 0 : index
    %c0_67 = arith.constant 0 : index
    %c0_68 = arith.constant 0 : index
    %293 = vector.load %arg8[%c0_66, %c0_67, %c0_68] : memref<2x8x44xf32, #tpu.memory_space<vmem>>, vector<1x8x4xf32>
    %294 = vector.shape_cast %293 : vector<1x8x4xf32> to vector<8x4xf32>
    %295 = vector.shape_cast %292 : vector<8x4xf32> to vector<1x8x4xf32>
    tpu.vector_store %arg8[%c0_66, %c0_67, %c0_68], %295 {strides = array<i32>} : memref<2x8x44xf32, #tpu.memory_space<vmem>>, vector<1x8x4xf32>,
    %296 = arith.mulf %281, %154 : vector<8x3xf32>
    %297 = arith.addf %296, %287 : vector<8x3xf32>
    %c0_69 = arith.constant 0 : index
    %c0_70 = arith.constant 0 : index
    %c4 = arith.constant 4 : index
    %298 = vector.load %arg8[%c0_69, %c0_70, %c4] : memref<2x8x44xf32, #tpu.memory_space<vmem>>, vector<1x8x3xf32>
    %299 = vector.shape_cast %298 : vector<1x8x3xf32> to vector<8x3xf32>
    %300 = vector.shape_cast %297 : vector<8x3xf32> to vector<1x8x3xf32>
    tpu.vector_store %arg8[%c0_69, %c0_70, %c4], %300 {strides = array<i32>} : memref<2x8x44xf32, #tpu.memory_space<vmem>>, vector<1x8x3xf32>,
    %c0_71 = arith.constant 0 : index
    %c0_72 = arith.constant 0 : index
    %c7 = arith.constant 7 : index
    %301 = vector.load %arg8[%c0_71, %c0_72, %c7] : memref<2x8x44xf32, #tpu.memory_space<vmem>>, vector<1x8x4xf32>
    %302 = vector.shape_cast %301 : vector<1x8x4xf32> to vector<8x4xf32>
    %303 = vector.shape_cast %144 : vector<8x4xf32> to vector<1x8x4xf32>
    tpu.vector_store %arg8[%c0_71, %c0_72, %c7], %303 {strides = array<i32>} : memref<2x8x44xf32, #tpu.memory_space<vmem>>, vector<1x8x4xf32>,
    %304 = arith.mulf %276, %148 : vector<8x4xf32>
    %305 = arith.addf %304, %284 : vector<8x4xf32>
    %c0_73 = arith.constant 0 : index
    %c0_74 = arith.constant 0 : index
    %c11 = arith.constant 11 : index
    %306 = vector.load %arg8[%c0_73, %c0_74, %c11] : memref<2x8x44xf32, #tpu.memory_space<vmem>>, vector<1x8x4xf32>
    %307 = vector.shape_cast %306 : vector<1x8x4xf32> to vector<8x4xf32>
    %308 = vector.shape_cast %305 : vector<8x4xf32> to vector<1x8x4xf32>
    tpu.vector_store %arg8[%c0_73, %c0_74, %c11], %308 {strides = array<i32>} : memref<2x8x44xf32, #tpu.memory_space<vmem>>, vector<1x8x4xf32>,
    %309 = arith.mulf %281, %156 : vector<8x3xf32>
    %310 = arith.addf %309, %287 : vector<8x3xf32>
    %c0_75 = arith.constant 0 : index
    %c0_76 = arith.constant 0 : index
    %c15 = arith.constant 15 : index
    %311 = vector.load %arg8[%c0_75, %c0_76, %c15] : memref<2x8x44xf32, #tpu.memory_space<vmem>>, vector<1x8x3xf32>
    %312 = vector.shape_cast %311 : vector<1x8x3xf32> to vector<8x3xf32>
    %313 = vector.shape_cast %310 : vector<8x3xf32> to vector<1x8x3xf32>
    tpu.vector_store %arg8[%c0_75, %c0_76, %c15], %313 {strides = array<i32>} : memref<2x8x44xf32, #tpu.memory_space<vmem>>, vector<1x8x3xf32>,
    %c0_77 = arith.constant 0 : index
    %c0_78 = arith.constant 0 : index
    %c18 = arith.constant 18 : index
    %314 = vector.load %arg8[%c0_77, %c0_78, %c18] : memref<2x8x44xf32, #tpu.memory_space<vmem>>, vector<1x8x4xf32>
    %315 = vector.shape_cast %314 : vector<1x8x4xf32> to vector<8x4xf32>
    %316 = vector.shape_cast %144 : vector<8x4xf32> to vector<1x8x4xf32>
    tpu.vector_store %arg8[%c0_77, %c0_78, %c18], %316 {strides = array<i32>} : memref<2x8x44xf32, #tpu.memory_space<vmem>>, vector<1x8x4xf32>,
    %317 = arith.mulf %276, %150 : vector<8x4xf32>
    %318 = arith.addf %317, %284 : vector<8x4xf32>
    %c0_79 = arith.constant 0 : index
    %c0_80 = arith.constant 0 : index
    %c22 = arith.constant 22 : index
    %319 = vector.load %arg8[%c0_79, %c0_80, %c22] : memref<2x8x44xf32, #tpu.memory_space<vmem>>, vector<1x8x4xf32>
    %320 = vector.shape_cast %319 : vector<1x8x4xf32> to vector<8x4xf32>
    %321 = vector.shape_cast %318 : vector<8x4xf32> to vector<1x8x4xf32>
    tpu.vector_store %arg8[%c0_79, %c0_80, %c22], %321 {strides = array<i32>} : memref<2x8x44xf32, #tpu.memory_space<vmem>>, vector<1x8x4xf32>,
    %322 = arith.mulf %281, %158 : vector<8x3xf32>
    %323 = arith.addf %322, %287 : vector<8x3xf32>
    %c0_81 = arith.constant 0 : index
    %c0_82 = arith.constant 0 : index
    %c26 = arith.constant 26 : index
    %324 = vector.load %arg8[%c0_81, %c0_82, %c26] : memref<2x8x44xf32, #tpu.memory_space<vmem>>, vector<1x8x3xf32>
    %325 = vector.shape_cast %324 : vector<1x8x3xf32> to vector<8x3xf32>
    %326 = vector.shape_cast %323 : vector<8x3xf32> to vector<1x8x3xf32>
    tpu.vector_store %arg8[%c0_81, %c0_82, %c26], %326 {strides = array<i32>} : memref<2x8x44xf32, #tpu.memory_space<vmem>>, vector<1x8x3xf32>,
    %c0_83 = arith.constant 0 : index
    %c0_84 = arith.constant 0 : index
    %c29 = arith.constant 29 : index
    %327 = vector.load %arg8[%c0_83, %c0_84, %c29] : memref<2x8x44xf32, #tpu.memory_space<vmem>>, vector<1x8x4xf32>
    %328 = vector.shape_cast %327 : vector<1x8x4xf32> to vector<8x4xf32>
    %329 = vector.shape_cast %144 : vector<8x4xf32> to vector<1x8x4xf32>
    tpu.vector_store %arg8[%c0_83, %c0_84, %c29], %329 {strides = array<i32>} : memref<2x8x44xf32, #tpu.memory_space<vmem>>, vector<1x8x4xf32>,
    %330 = arith.mulf %276, %152 : vector<8x4xf32>
    %331 = arith.addf %330, %284 : vector<8x4xf32>
    %c0_85 = arith.constant 0 : index
    %c0_86 = arith.constant 0 : index
    %c33 = arith.constant 33 : index
    %332 = vector.load %arg8[%c0_85, %c0_86, %c33] : memref<2x8x44xf32, #tpu.memory_space<vmem>>, vector<1x8x4xf32>
    %333 = vector.shape_cast %332 : vector<1x8x4xf32> to vector<8x4xf32>
    %334 = vector.shape_cast %331 : vector<8x4xf32> to vector<1x8x4xf32>
    tpu.vector_store %arg8[%c0_85, %c0_86, %c33], %334 {strides = array<i32>} : memref<2x8x44xf32, #tpu.memory_space<vmem>>, vector<1x8x4xf32>,
    %335 = arith.mulf %281, %160 : vector<8x3xf32>
    %336 = arith.addf %335, %287 : vector<8x3xf32>
    %c0_87 = arith.constant 0 : index
    %c0_88 = arith.constant 0 : index
    %c37 = arith.constant 37 : index
    %337 = vector.load %arg8[%c0_87, %c0_88, %c37] : memref<2x8x44xf32, #tpu.memory_space<vmem>>, vector<1x8x3xf32>
    %338 = vector.shape_cast %337 : vector<1x8x3xf32> to vector<8x3xf32>
    %339 = vector.shape_cast %336 : vector<8x3xf32> to vector<1x8x3xf32>
    tpu.vector_store %arg8[%c0_87, %c0_88, %c37], %339 {strides = array<i32>} : memref<2x8x44xf32, #tpu.memory_space<vmem>>, vector<1x8x3xf32>,
    %c0_89 = arith.constant 0 : index
    %c0_90 = arith.constant 0 : index
    %c40 = arith.constant 40 : index
    %340 = vector.load %arg8[%c0_89, %c0_90, %c40] : memref<2x8x44xf32, #tpu.memory_space<vmem>>, vector<1x8x4xf32>
    %341 = vector.shape_cast %340 : vector<1x8x4xf32> to vector<8x4xf32>
    %342 = vector.shape_cast %144 : vector<8x4xf32> to vector<1x8x4xf32>
    tpu.vector_store %arg8[%c0_89, %c0_90, %c40], %342 {strides = array<i32>} : memref<2x8x44xf32, #tpu.memory_space<vmem>>, vector<1x8x4xf32>,
    %343 = vector.extract_strided_slice %0 {offsets = [1, 0, 0], sizes = [1, 3, 16], strides = [1, 1, 1]} : vector<2x3x16xf32> to vector<1x3x16xf32>
    %344 = vector.shape_cast %343 : vector<1x3x16xf32> to vector<3x16xf32>
    %c1 = arith.constant 1 : index
    %c0_91 = arith.constant 0 : index
    %c0_92 = arith.constant 0 : index
    %345 = vector.load %arg3[%c1, %c0_91, %c0_92] : memref<2x16x3xf32, #tpu.memory_space<vmem>>, vector<1x16x3xf32>
    %346 = vector.shape_cast %345 : vector<1x16x3xf32> to vector<16x3xf32>
    %c1_93 = arith.constant 1 : index
    %c0_94 = arith.constant 0 : index
    %c0_95 = arith.constant 0 : index
    %347 = vector.load %arg4[%c1_93, %c0_94, %c0_95] : memref<2x16x4xf32, #tpu.memory_space<vmem>>, vector<1x16x4xf32>
    %348 = vector.shape_cast %347 : vector<1x16x4xf32> to vector<16x4xf32>
    %349 = vector.extract_strided_slice %27 {offsets = [0, 1], sizes = [8, 1], strides = [1, 1]} : vector<8x2xf32> to vector<8x1xf32>
    %350 = vector.broadcast %2 : vector<1x16xf32> to vector<8x16xf32>
    %351 = vector.broadcast %349 : vector<8x1xf32> to vector<8x16xf32>
    %352 = arith.cmpf oeq, %350, %351 : vector<8x16xf32>
    %353 = arith.extui %352 : vector<8x16xi1> to vector<8x16xi32>
    %354 = arith.sitofp %353 : vector<8x16xi32> to vector<8x16xf32>
    %355 = vector.extract_strided_slice %344 {offsets = [0, 0], sizes = [1, 16], strides = [1, 1]} : vector<3x16xf32> to vector<1x16xf32>
    %356 = vector.broadcast %355 : vector<1x16xf32> to vector<8x16xf32>
    %357 = arith.mulf %354, %356 : vector<8x16xf32>
    %cst_96 = arith.constant dense<0.000000e+00> : vector<8xf32>
    %358 = vector.multi_reduction <add>, %357, %cst_96 [1] : vector<8x16xf32> to vector<8xf32>
    %359 = vector.shape_cast %358 : vector<8xf32> to vector<8x1xf32>
    %360 = vector.extract_strided_slice %344 {offsets = [1, 0], sizes = [1, 16], strides = [1, 1]} : vector<3x16xf32> to vector<1x16xf32>
    %361 = vector.broadcast %360 : vector<1x16xf32> to vector<8x16xf32>
    %362 = arith.mulf %354, %361 : vector<8x16xf32>
    %cst_97 = arith.constant dense<0.000000e+00> : vector<8xf32>
    %363 = vector.multi_reduction <add>, %362, %cst_97 [1] : vector<8x16xf32> to vector<8xf32>
    %364 = vector.shape_cast %363 : vector<8xf32> to vector<8x1xf32>
    %365 = vector.extract_strided_slice %344 {offsets = [2, 0], sizes = [1, 16], strides = [1, 1]} : vector<3x16xf32> to vector<1x16xf32>
    %366 = vector.broadcast %365 : vector<1x16xf32> to vector<8x16xf32>
    %367 = arith.mulf %354, %366 : vector<8x16xf32>
    %cst_98 = arith.constant dense<0.000000e+00> : vector<8xf32>
    %368 = vector.multi_reduction <add>, %367, %cst_98 [1] : vector<8x16xf32> to vector<8xf32>
    %369 = vector.shape_cast %368 : vector<8xf32> to vector<8x1xf32>
    %370 = tpu.concatenate %359, %364, %369 in 1 : vector<8x1xf32>, vector<8x1xf32>, vector<8x1xf32> -> vector<8x3xf32>
    %371 = vector.extract_strided_slice %344 {offsets = [0, 0], sizes = [1, 16], strides = [1, 1]} : vector<3x16xf32> to vector<1x16xf32>
    %372 = vector.broadcast %359 : vector<8x1xf32> to vector<8x16xf32>
    %373 = vector.broadcast %371 : vector<1x16xf32> to vector<8x16xf32>
    %374 = arith.subf %372, %373 : vector<8x16xf32>
    %375 = arith.mulf %374, %374 : vector<8x16xf32>
    %376 = vector.extract_strided_slice %344 {offsets = [1, 0], sizes = [1, 16], strides = [1, 1]} : vector<3x16xf32> to vector<1x16xf32>
    %377 = vector.broadcast %364 : vector<8x1xf32> to vector<8x16xf32>
    %378 = vector.broadcast %376 : vector<1x16xf32> to vector<8x16xf32>
    %379 = arith.subf %377, %378 : vector<8x16xf32>
    %380 = arith.mulf %379, %379 : vector<8x16xf32>
    %381 = arith.addf %375, %380 : vector<8x16xf32>
    %382 = vector.extract_strided_slice %344 {offsets = [2, 0], sizes = [1, 16], strides = [1, 1]} : vector<3x16xf32> to vector<1x16xf32>
    %383 = vector.broadcast %369 : vector<8x1xf32> to vector<8x16xf32>
    %384 = vector.broadcast %382 : vector<1x16xf32> to vector<8x16xf32>
    %385 = arith.subf %383, %384 : vector<8x16xf32>
    %386 = arith.mulf %385, %385 : vector<8x16xf32>
    %387 = arith.addf %381, %386 : vector<8x16xf32>
    %cst_99 = arith.constant dense<0x7F800000> : vector<8xf32>
    %388 = vector.multi_reduction <minimumf>, %387, %cst_99 [1] : vector<8x16xf32> to vector<8xf32>
    %389 = vector.shape_cast %388 : vector<8xf32> to vector<8x1xf32>
    %390 = vector.broadcast %389 : vector<8x1xf32> to vector<8x16xf32>
    %391 = arith.cmpf ole, %387, %390 : vector<8x16xf32>
    %c16_i32_100 = arith.constant 16 : i32
    %392 = vector.shape_cast %1 : vector<1x16xi32> to vector<1x16xi32>
    %393 = vector.broadcast %392 : vector<1x16xi32> to vector<8x16xi32>
    %394 = vector.broadcast %c16_i32_100 : i32 to vector<8x16xi32>
    %395 = arith.select %391, %393, %394 : vector<8x16xi1>, vector<8x16xi32>
    %cst_101 = arith.constant dense<2147483647> : vector<8xi32>
    %396 = vector.multi_reduction <minsi>, %395, %cst_101 [1] : vector<8x16xi32> to vector<8xi32>
    %397 = vector.shape_cast %396 : vector<8xi32> to vector<8x1xi32>
    %398 = vector.broadcast %1 : vector<1x16xi32> to vector<8x16xi32>
    %399 = vector.broadcast %397 : vector<8x1xi32> to vector<8x16xi32>
    %400 = arith.cmpi eq, %398, %399 : vector<8x16xi32>
    %401 = arith.extui %400 : vector<8x16xi1> to vector<8x16xi32>
    %402 = arith.sitofp %401 : vector<8x16xi32> to vector<8x16xf32>
    %cst_102 = arith.constant 1.000000e+30 : f32
    %403 = vector.broadcast %cst_102 : f32 to vector<8x16xf32>
    %404 = arith.select %400, %403, %387 : vector<8x16xi1>, vector<8x16xf32>
    %cst_103 = arith.constant dense<0x7F800000> : vector<8xf32>
    %405 = vector.multi_reduction <minimumf>, %404, %cst_103 [1] : vector<8x16xf32> to vector<8xf32>
    %406 = vector.shape_cast %405 : vector<8xf32> to vector<8x1xf32>
    %407 = vector.broadcast %406 : vector<8x1xf32> to vector<8x16xf32>
    %408 = arith.cmpf ole, %404, %407 : vector<8x16xf32>
    %c16_i32_104 = arith.constant 16 : i32
    %409 = vector.shape_cast %1 : vector<1x16xi32> to vector<1x16xi32>
    %410 = vector.broadcast %409 : vector<1x16xi32> to vector<8x16xi32>
    %411 = vector.broadcast %c16_i32_104 : i32 to vector<8x16xi32>
    %412 = arith.select %408, %410, %411 : vector<8x16xi1>, vector<8x16xi32>
    %cst_105 = arith.constant dense<2147483647> : vector<8xi32>
    %413 = vector.multi_reduction <minsi>, %412, %cst_105 [1] : vector<8x16xi32> to vector<8xi32>
    %414 = vector.shape_cast %413 : vector<8xi32> to vector<8x1xi32>
    %415 = vector.broadcast %1 : vector<1x16xi32> to vector<8x16xi32>
    %416 = vector.broadcast %414 : vector<8x1xi32> to vector<8x16xi32>
    %417 = arith.cmpi eq, %415, %416 : vector<8x16xi32>
    %418 = arith.extui %417 : vector<8x16xi1> to vector<8x16xi32>
    %419 = arith.sitofp %418 : vector<8x16xi32> to vector<8x16xf32>
    %cst_106 = arith.constant 1.000000e+30 : f32
    %420 = vector.broadcast %cst_106 : f32 to vector<8x16xf32>
    %421 = arith.select %417, %420, %404 : vector<8x16xi1>, vector<8x16xf32>
    %cst_107 = arith.constant dense<0x7F800000> : vector<8xf32>
    %422 = vector.multi_reduction <minimumf>, %421, %cst_107 [1] : vector<8x16xf32> to vector<8xf32>
    %423 = vector.shape_cast %422 : vector<8xf32> to vector<8x1xf32>
    %424 = vector.broadcast %423 : vector<8x1xf32> to vector<8x16xf32>
    %425 = arith.cmpf ole, %421, %424 : vector<8x16xf32>
    %c16_i32_108 = arith.constant 16 : i32
    %426 = vector.shape_cast %1 : vector<1x16xi32> to vector<1x16xi32>
    %427 = vector.broadcast %426 : vector<1x16xi32> to vector<8x16xi32>
    %428 = vector.broadcast %c16_i32_108 : i32 to vector<8x16xi32>
    %429 = arith.select %425, %427, %428 : vector<8x16xi1>, vector<8x16xi32>
    %cst_109 = arith.constant dense<2147483647> : vector<8xi32>
    %430 = vector.multi_reduction <minsi>, %429, %cst_109 [1] : vector<8x16xi32> to vector<8xi32>
    %431 = vector.shape_cast %430 : vector<8xi32> to vector<8x1xi32>
    %432 = vector.broadcast %1 : vector<1x16xi32> to vector<8x16xi32>
    %433 = vector.broadcast %431 : vector<8x1xi32> to vector<8x16xi32>
    %434 = arith.cmpi eq, %432, %433 : vector<8x16xi32>
    %435 = arith.extui %434 : vector<8x16xi1> to vector<8x16xi32>
    %436 = arith.sitofp %435 : vector<8x16xi32> to vector<8x16xf32>
    %cst_110 = arith.constant 1.000000e+30 : f32
    %437 = vector.broadcast %cst_110 : f32 to vector<8x16xf32>
    %438 = arith.select %434, %437, %421 : vector<8x16xi1>, vector<8x16xf32>
    %cst_111 = arith.constant dense<0x7F800000> : vector<8xf32>
    %439 = vector.multi_reduction <minimumf>, %438, %cst_111 [1] : vector<8x16xf32> to vector<8xf32>
    %440 = vector.shape_cast %439 : vector<8xf32> to vector<8x1xf32>
    %441 = vector.broadcast %440 : vector<8x1xf32> to vector<8x16xf32>
    %442 = arith.cmpf ole, %438, %441 : vector<8x16xf32>
    %c16_i32_112 = arith.constant 16 : i32
    %443 = vector.shape_cast %1 : vector<1x16xi32> to vector<1x16xi32>
    %444 = vector.broadcast %443 : vector<1x16xi32> to vector<8x16xi32>
    %445 = vector.broadcast %c16_i32_112 : i32 to vector<8x16xi32>
    %446 = arith.select %442, %444, %445 : vector<8x16xi1>, vector<8x16xi32>
    %cst_113 = arith.constant dense<2147483647> : vector<8xi32>
    %447 = vector.multi_reduction <minsi>, %446, %cst_113 [1] : vector<8x16xi32> to vector<8xi32>
    %448 = vector.shape_cast %447 : vector<8xi32> to vector<8x1xi32>
    %449 = vector.broadcast %1 : vector<1x16xi32> to vector<8x16xi32>
    %450 = vector.broadcast %448 : vector<8x1xi32> to vector<8x16xi32>
    %451 = arith.cmpi eq, %449, %450 : vector<8x16xi32>
    %452 = arith.extui %451 : vector<8x16xi1> to vector<8x16xi32>
    %453 = arith.sitofp %452 : vector<8x16xi32> to vector<8x16xf32>
    %454 = tpu.concatenate %354, %402, %419, %436, %453 in 0 : vector<8x16xf32>, vector<8x16xf32>, vector<8x16xf32>, vector<8x16xf32>, vector<8x16xf32> -> vector<40x16xf32>
    %cst_114 = arith.constant dense<0.000000e+00> : vector<40x4xf32>
    %455 = tpu.matmul %454, %348, %cst_114 {dimension_numbers = #tpu.dot_dimension_numbers<[1], [0], [0], [1], [0, 0, 1, 1], [], []>} : vector<40x16xf32>, vector<16x4xf32>, vector<40x4xf32> -> vector<40x4xf32>
    %cst_115 = arith.constant dense<0.000000e+00> : vector<40x3xf32>
    %456 = tpu.matmul %454, %346, %cst_115 {dimension_numbers = #tpu.dot_dimension_numbers<[1], [0], [0], [1], [0, 0, 1, 1], [], []>} : vector<40x16xf32>, vector<16x3xf32>, vector<40x3xf32> -> vector<40x3xf32>
    %457 = vector.extract_strided_slice %455 {offsets = [0, 0], sizes = [8, 4], strides = [1, 1]} : vector<40x4xf32> to vector<8x4xf32>
    %458 = vector.extract_strided_slice %455 {offsets = [8, 0], sizes = [8, 4], strides = [1, 1]} : vector<40x4xf32> to vector<8x4xf32>
    %459 = arith.subf %458, %457 : vector<8x4xf32>
    %460 = vector.extract_strided_slice %455 {offsets = [16, 0], sizes = [8, 4], strides = [1, 1]} : vector<40x4xf32> to vector<8x4xf32>
    %461 = arith.subf %460, %457 : vector<8x4xf32>
    %462 = vector.extract_strided_slice %455 {offsets = [24, 0], sizes = [8, 4], strides = [1, 1]} : vector<40x4xf32> to vector<8x4xf32>
    %463 = arith.subf %462, %457 : vector<8x4xf32>
    %464 = vector.extract_strided_slice %455 {offsets = [32, 0], sizes = [8, 4], strides = [1, 1]} : vector<40x4xf32> to vector<8x4xf32>
    %465 = arith.subf %464, %457 : vector<8x4xf32>
    %466 = vector.extract_strided_slice %456 {offsets = [8, 0], sizes = [8, 3], strides = [1, 1]} : vector<40x3xf32> to vector<8x3xf32>
    %467 = arith.subf %466, %370 : vector<8x3xf32>
    %468 = vector.extract_strided_slice %456 {offsets = [16, 0], sizes = [8, 3], strides = [1, 1]} : vector<40x3xf32> to vector<8x3xf32>
    %469 = arith.subf %468, %370 : vector<8x3xf32>
    %470 = vector.extract_strided_slice %456 {offsets = [24, 0], sizes = [8, 3], strides = [1, 1]} : vector<40x3xf32> to vector<8x3xf32>
    %471 = arith.subf %470, %370 : vector<8x3xf32>
    %472 = vector.extract_strided_slice %456 {offsets = [32, 0], sizes = [8, 3], strides = [1, 1]} : vector<40x3xf32> to vector<8x3xf32>
    %473 = arith.subf %472, %370 : vector<8x3xf32>
    %474 = vector.shape_cast %459 : vector<8x4xf32> to vector<1x8x4xf32>
    %cst_116 = arith.constant dense<0.000000e+00> : vector<1xf32>
    %475 = vector.multi_reduction <add>, %474, %cst_116 [1, 2] : vector<1x8x4xf32> to vector<1xf32>
    %476 = vector.shape_cast %475 : vector<1xf32> to vector<1x1x1xf32>
    %477 = vector.extract %476[0, 0, 0] : f32 from vector<1x1x1xf32>
    %cst_117 = arith.constant 0.000000e+00 : f32
    %478 = arith.addf %cst_117, %477 : f32
    %479 = vector.shape_cast %461 : vector<8x4xf32> to vector<1x8x4xf32>
    %cst_118 = arith.constant dense<0.000000e+00> : vector<1xf32>
    %480 = vector.multi_reduction <add>, %479, %cst_118 [1, 2] : vector<1x8x4xf32> to vector<1xf32>
    %481 = vector.shape_cast %480 : vector<1xf32> to vector<1x1x1xf32>
    %482 = vector.extract %481[0, 0, 0] : f32 from vector<1x1x1xf32>
    %483 = arith.addf %478, %482 : f32
    %484 = vector.shape_cast %463 : vector<8x4xf32> to vector<1x8x4xf32>
    %cst_119 = arith.constant dense<0.000000e+00> : vector<1xf32>
    %485 = vector.multi_reduction <add>, %484, %cst_119 [1, 2] : vector<1x8x4xf32> to vector<1xf32>
    %486 = vector.shape_cast %485 : vector<1xf32> to vector<1x1x1xf32>
    %487 = vector.extract %486[0, 0, 0] : f32 from vector<1x1x1xf32>
    %488 = arith.addf %483, %487 : f32
    %489 = vector.shape_cast %465 : vector<8x4xf32> to vector<1x8x4xf32>
    %cst_120 = arith.constant dense<0.000000e+00> : vector<1xf32>
    %490 = vector.multi_reduction <add>, %489, %cst_120 [1, 2] : vector<1x8x4xf32> to vector<1xf32>
    %491 = vector.shape_cast %490 : vector<1xf32> to vector<1x1x1xf32>
    %492 = vector.extract %491[0, 0, 0] : f32 from vector<1x1x1xf32>
    %493 = arith.addf %488, %492 : f32
    %494 = vector.shape_cast %467 : vector<8x3xf32> to vector<1x8x3xf32>
    %cst_121 = arith.constant dense<0.000000e+00> : vector<1xf32>
    %495 = vector.multi_reduction <add>, %494, %cst_121 [1, 2] : vector<1x8x3xf32> to vector<1xf32>
    %496 = vector.shape_cast %495 : vector<1xf32> to vector<1x1x1xf32>
    %497 = vector.extract %496[0, 0, 0] : f32 from vector<1x1x1xf32>
    %cst_122 = arith.constant 0.000000e+00 : f32
    %498 = arith.addf %cst_122, %497 : f32
    %499 = vector.shape_cast %469 : vector<8x3xf32> to vector<1x8x3xf32>
    %cst_123 = arith.constant dense<0.000000e+00> : vector<1xf32>
    %500 = vector.multi_reduction <add>, %499, %cst_123 [1, 2] : vector<1x8x3xf32> to vector<1xf32>
    %501 = vector.shape_cast %500 : vector<1xf32> to vector<1x1x1xf32>
    %502 = vector.extract %501[0, 0, 0] : f32 from vector<1x1x1xf32>
    %503 = arith.addf %498, %502 : f32
    %504 = vector.shape_cast %471 : vector<8x3xf32> to vector<1x8x3xf32>
    %cst_124 = arith.constant dense<0.000000e+00> : vector<1xf32>
    %505 = vector.multi_reduction <add>, %504, %cst_124 [1, 2] : vector<1x8x3xf32> to vector<1xf32>
    %506 = vector.shape_cast %505 : vector<1xf32> to vector<1x1x1xf32>
    %507 = vector.extract %506[0, 0, 0] : f32 from vector<1x1x1xf32>
    %508 = arith.addf %503, %507 : f32
    %509 = vector.shape_cast %473 : vector<8x3xf32> to vector<1x8x3xf32>
    %cst_125 = arith.constant dense<0.000000e+00> : vector<1xf32>
    %510 = vector.multi_reduction <add>, %509, %cst_125 [1, 2] : vector<1x8x3xf32> to vector<1xf32>
    %511 = vector.shape_cast %510 : vector<1xf32> to vector<1x1x1xf32>
    %512 = vector.extract %511[0, 0, 0] : f32 from vector<1x1x1xf32>
    %513 = arith.addf %508, %512 : f32
    %514 = arith.addf %493, %513 : f32
    %cst_126 = arith.constant 2.240000e+02 : f32
    %515 = arith.divf %514, %cst_126 : f32
    %516 = vector.broadcast %515 : f32 to vector<8x4xf32>
    %517 = arith.subf %459, %516 : vector<8x4xf32>
    %518 = arith.mulf %517, %517 : vector<8x4xf32>
    %519 = vector.shape_cast %518 : vector<8x4xf32> to vector<1x8x4xf32>
    %cst_127 = arith.constant dense<0.000000e+00> : vector<1xf32>
    %520 = vector.multi_reduction <add>, %519, %cst_127 [1, 2] : vector<1x8x4xf32> to vector<1xf32>
    %521 = vector.shape_cast %520 : vector<1xf32> to vector<1x1x1xf32>
    %522 = vector.extract %521[0, 0, 0] : f32 from vector<1x1x1xf32>
    %cst_128 = arith.constant 0.000000e+00 : f32
    %523 = arith.addf %cst_128, %522 : f32
    %524 = vector.broadcast %515 : f32 to vector<8x4xf32>
    %525 = arith.subf %461, %524 : vector<8x4xf32>
    %526 = arith.mulf %525, %525 : vector<8x4xf32>
    %527 = vector.shape_cast %526 : vector<8x4xf32> to vector<1x8x4xf32>
    %cst_129 = arith.constant dense<0.000000e+00> : vector<1xf32>
    %528 = vector.multi_reduction <add>, %527, %cst_129 [1, 2] : vector<1x8x4xf32> to vector<1xf32>
    %529 = vector.shape_cast %528 : vector<1xf32> to vector<1x1x1xf32>
    %530 = vector.extract %529[0, 0, 0] : f32 from vector<1x1x1xf32>
    %531 = arith.addf %523, %530 : f32
    %532 = vector.broadcast %515 : f32 to vector<8x4xf32>
    %533 = arith.subf %463, %532 : vector<8x4xf32>
    %534 = arith.mulf %533, %533 : vector<8x4xf32>
    %535 = vector.shape_cast %534 : vector<8x4xf32> to vector<1x8x4xf32>
    %cst_130 = arith.constant dense<0.000000e+00> : vector<1xf32>
    %536 = vector.multi_reduction <add>, %535, %cst_130 [1, 2] : vector<1x8x4xf32> to vector<1xf32>
    %537 = vector.shape_cast %536 : vector<1xf32> to vector<1x1x1xf32>
    %538 = vector.extract %537[0, 0, 0] : f32 from vector<1x1x1xf32>
    %539 = arith.addf %531, %538 : f32
    %540 = vector.broadcast %515 : f32 to vector<8x4xf32>
    %541 = arith.subf %465, %540 : vector<8x4xf32>
    %542 = arith.mulf %541, %541 : vector<8x4xf32>
    %543 = vector.shape_cast %542 : vector<8x4xf32> to vector<1x8x4xf32>
    %cst_131 = arith.constant dense<0.000000e+00> : vector<1xf32>
    %544 = vector.multi_reduction <add>, %543, %cst_131 [1, 2] : vector<1x8x4xf32> to vector<1xf32>
    %545 = vector.shape_cast %544 : vector<1xf32> to vector<1x1x1xf32>
    %546 = vector.extract %545[0, 0, 0] : f32 from vector<1x1x1xf32>
    %547 = arith.addf %539, %546 : f32
    %548 = vector.broadcast %515 : f32 to vector<8x3xf32>
    %549 = arith.subf %467, %548 : vector<8x3xf32>
    %550 = arith.mulf %549, %549 : vector<8x3xf32>
    %551 = vector.shape_cast %550 : vector<8x3xf32> to vector<1x8x3xf32>
    %cst_132 = arith.constant dense<0.000000e+00> : vector<1xf32>
    %552 = vector.multi_reduction <add>, %551, %cst_132 [1, 2] : vector<1x8x3xf32> to vector<1xf32>
    %553 = vector.shape_cast %552 : vector<1xf32> to vector<1x1x1xf32>
    %554 = vector.extract %553[0, 0, 0] : f32 from vector<1x1x1xf32>
    %cst_133 = arith.constant 0.000000e+00 : f32
    %555 = arith.addf %cst_133, %554 : f32
    %556 = vector.broadcast %515 : f32 to vector<8x3xf32>
    %557 = arith.subf %469, %556 : vector<8x3xf32>
    %558 = arith.mulf %557, %557 : vector<8x3xf32>
    %559 = vector.shape_cast %558 : vector<8x3xf32> to vector<1x8x3xf32>
    %cst_134 = arith.constant dense<0.000000e+00> : vector<1xf32>
    %560 = vector.multi_reduction <add>, %559, %cst_134 [1, 2] : vector<1x8x3xf32> to vector<1xf32>
    %561 = vector.shape_cast %560 : vector<1xf32> to vector<1x1x1xf32>
    %562 = vector.extract %561[0, 0, 0] : f32 from vector<1x1x1xf32>
    %563 = arith.addf %555, %562 : f32
    %564 = vector.broadcast %515 : f32 to vector<8x3xf32>
    %565 = arith.subf %471, %564 : vector<8x3xf32>
    %566 = arith.mulf %565, %565 : vector<8x3xf32>
    %567 = vector.shape_cast %566 : vector<8x3xf32> to vector<1x8x3xf32>
    %cst_135 = arith.constant dense<0.000000e+00> : vector<1xf32>
    %568 = vector.multi_reduction <add>, %567, %cst_135 [1, 2] : vector<1x8x3xf32> to vector<1xf32>
    %569 = vector.shape_cast %568 : vector<1xf32> to vector<1x1x1xf32>
    %570 = vector.extract %569[0, 0, 0] : f32 from vector<1x1x1xf32>
    %571 = arith.addf %563, %570 : f32
    %572 = vector.broadcast %515 : f32 to vector<8x3xf32>
    %573 = arith.subf %473, %572 : vector<8x3xf32>
    %574 = arith.mulf %573, %573 : vector<8x3xf32>
    %575 = vector.shape_cast %574 : vector<8x3xf32> to vector<1x8x3xf32>
    %cst_136 = arith.constant dense<0.000000e+00> : vector<1xf32>
    %576 = vector.multi_reduction <add>, %575, %cst_136 [1, 2] : vector<1x8x3xf32> to vector<1xf32>
    %577 = vector.shape_cast %576 : vector<1xf32> to vector<1x1x1xf32>
    %578 = vector.extract %577[0, 0, 0] : f32 from vector<1x1x1xf32>
    %579 = arith.addf %571, %578 : f32
    %580 = arith.addf %547, %579 : f32
    %cst_137 = arith.constant 2.230000e+02 : f32
    %581 = arith.divf %580, %cst_137 : f32
    %582 = math.sqrt %581 : f32
    %cst_138 = arith.constant 9.99999974E-6 : f32
    %583 = arith.addf %582, %cst_138 : f32
    %cst_139 = arith.constant 1.000000e+00 : f32
    %584 = arith.divf %cst_139, %583 : f32
    %585 = vector.extract_strided_slice %28 {offsets = [0, 0], sizes = [1, 4], strides = [1, 1]} : vector<1x7xf32> to vector<1x4xf32>
    %586 = vector.broadcast %584 : f32 to vector<1x4xf32>
    %587 = arith.mulf %585, %586 : vector<1x4xf32>
    %588 = vector.shape_cast %587 : vector<1x4xf32> to vector<1x4xf32>
    %589 = vector.broadcast %588 : vector<1x4xf32> to vector<8x4xf32>
    %590 = vector.extract_strided_slice %28 {offsets = [0, 4], sizes = [1, 3], strides = [1, 1]} : vector<1x7xf32> to vector<1x3xf32>
    %591 = vector.broadcast %584 : f32 to vector<1x3xf32>
    %592 = arith.mulf %590, %591 : vector<1x3xf32>
    %593 = vector.shape_cast %592 : vector<1x3xf32> to vector<1x3xf32>
    %594 = vector.broadcast %593 : vector<1x3xf32> to vector<8x3xf32>
    %595 = vector.extract_strided_slice %29 {offsets = [0, 0], sizes = [1, 4], strides = [1, 1]} : vector<1x7xf32> to vector<1x4xf32>
    %596 = vector.shape_cast %595 : vector<1x4xf32> to vector<1x4xf32>
    %597 = vector.broadcast %596 : vector<1x4xf32> to vector<8x4xf32>
    %598 = vector.extract_strided_slice %29 {offsets = [0, 4], sizes = [1, 3], strides = [1, 1]} : vector<1x7xf32> to vector<1x3xf32>
    %599 = vector.shape_cast %598 : vector<1x3xf32> to vector<1x3xf32>
    %600 = vector.broadcast %599 : vector<1x3xf32> to vector<8x3xf32>
    %c1_140 = arith.constant 1 : index
    %c0_141 = arith.constant 0 : index
    %c0_142 = arith.constant 0 : index
    %601 = vector.load %arg7[%c1_140, %c0_141, %c0_142] : memref<2x8x3xf32, #tpu.memory_space<vmem>>, vector<1x8x3xf32>
    %602 = vector.shape_cast %601 : vector<1x8x3xf32> to vector<8x3xf32>
    %603 = vector.shape_cast %370 : vector<8x3xf32> to vector<1x8x3xf32>
    tpu.vector_store %arg7[%c1_140, %c0_141, %c0_142], %603 {strides = array<i32>} : memref<2x8x3xf32, #tpu.memory_space<vmem>>, vector<1x8x3xf32>,
    %604 = arith.mulf %589, %459 : vector<8x4xf32>
    %605 = arith.addf %604, %597 : vector<8x4xf32>
    %c1_143 = arith.constant 1 : index
    %c0_144 = arith.constant 0 : index
    %c0_145 = arith.constant 0 : index
    %606 = vector.load %arg8[%c1_143, %c0_144, %c0_145] : memref<2x8x44xf32, #tpu.memory_space<vmem>>, vector<1x8x4xf32>
    %607 = vector.shape_cast %606 : vector<1x8x4xf32> to vector<8x4xf32>
    %608 = vector.shape_cast %605 : vector<8x4xf32> to vector<1x8x4xf32>
    tpu.vector_store %arg8[%c1_143, %c0_144, %c0_145], %608 {strides = array<i32>} : memref<2x8x44xf32, #tpu.memory_space<vmem>>, vector<1x8x4xf32>,
    %609 = arith.mulf %594, %467 : vector<8x3xf32>
    %610 = arith.addf %609, %600 : vector<8x3xf32>
    %c1_146 = arith.constant 1 : index
    %c0_147 = arith.constant 0 : index
    %c4_148 = arith.constant 4 : index
    %611 = vector.load %arg8[%c1_146, %c0_147, %c4_148] : memref<2x8x44xf32, #tpu.memory_space<vmem>>, vector<1x8x3xf32>
    %612 = vector.shape_cast %611 : vector<1x8x3xf32> to vector<8x3xf32>
    %613 = vector.shape_cast %610 : vector<8x3xf32> to vector<1x8x3xf32>
    tpu.vector_store %arg8[%c1_146, %c0_147, %c4_148], %613 {strides = array<i32>} : memref<2x8x44xf32, #tpu.memory_space<vmem>>, vector<1x8x3xf32>,
    %c1_149 = arith.constant 1 : index
    %c0_150 = arith.constant 0 : index
    %c7_151 = arith.constant 7 : index
    %614 = vector.load %arg8[%c1_149, %c0_150, %c7_151] : memref<2x8x44xf32, #tpu.memory_space<vmem>>, vector<1x8x4xf32>
    %615 = vector.shape_cast %614 : vector<1x8x4xf32> to vector<8x4xf32>
    %616 = vector.shape_cast %457 : vector<8x4xf32> to vector<1x8x4xf32>
    tpu.vector_store %arg8[%c1_149, %c0_150, %c7_151], %616 {strides = array<i32>} : memref<2x8x44xf32, #tpu.memory_space<vmem>>, vector<1x8x4xf32>,
    %617 = arith.mulf %589, %461 : vector<8x4xf32>
    %618 = arith.addf %617, %597 : vector<8x4xf32>
    %c1_152 = arith.constant 1 : index
    %c0_153 = arith.constant 0 : index
    %c11_154 = arith.constant 11 : index
    %619 = vector.load %arg8[%c1_152, %c0_153, %c11_154] : memref<2x8x44xf32, #tpu.memory_space<vmem>>, vector<1x8x4xf32>
    %620 = vector.shape_cast %619 : vector<1x8x4xf32> to vector<8x4xf32>
    %621 = vector.shape_cast %618 : vector<8x4xf32> to vector<1x8x4xf32>
    tpu.vector_store %arg8[%c1_152, %c0_153, %c11_154], %621 {strides = array<i32>} : memref<2x8x44xf32, #tpu.memory_space<vmem>>, vector<1x8x4xf32>,
    %622 = arith.mulf %594, %469 : vector<8x3xf32>
    %623 = arith.addf %622, %600 : vector<8x3xf32>
    %c1_155 = arith.constant 1 : index
    %c0_156 = arith.constant 0 : index
    %c15_157 = arith.constant 15 : index
    %624 = vector.load %arg8[%c1_155, %c0_156, %c15_157] : memref<2x8x44xf32, #tpu.memory_space<vmem>>, vector<1x8x3xf32>
    %625 = vector.shape_cast %624 : vector<1x8x3xf32> to vector<8x3xf32>
    %626 = vector.shape_cast %623 : vector<8x3xf32> to vector<1x8x3xf32>
    tpu.vector_store %arg8[%c1_155, %c0_156, %c15_157], %626 {strides = array<i32>} : memref<2x8x44xf32, #tpu.memory_space<vmem>>, vector<1x8x3xf32>,
    %c1_158 = arith.constant 1 : index
    %c0_159 = arith.constant 0 : index
    %c18_160 = arith.constant 18 : index
    %627 = vector.load %arg8[%c1_158, %c0_159, %c18_160] : memref<2x8x44xf32, #tpu.memory_space<vmem>>, vector<1x8x4xf32>
    %628 = vector.shape_cast %627 : vector<1x8x4xf32> to vector<8x4xf32>
    %629 = vector.shape_cast %457 : vector<8x4xf32> to vector<1x8x4xf32>
    tpu.vector_store %arg8[%c1_158, %c0_159, %c18_160], %629 {strides = array<i32>} : memref<2x8x44xf32, #tpu.memory_space<vmem>>, vector<1x8x4xf32>,
    %630 = arith.mulf %589, %463 : vector<8x4xf32>
    %631 = arith.addf %630, %597 : vector<8x4xf32>
    %c1_161 = arith.constant 1 : index
    %c0_162 = arith.constant 0 : index
    %c22_163 = arith.constant 22 : index
    %632 = vector.load %arg8[%c1_161, %c0_162, %c22_163] : memref<2x8x44xf32, #tpu.memory_space<vmem>>, vector<1x8x4xf32>
    %633 = vector.shape_cast %632 : vector<1x8x4xf32> to vector<8x4xf32>
    %634 = vector.shape_cast %631 : vector<8x4xf32> to vector<1x8x4xf32>
    tpu.vector_store %arg8[%c1_161, %c0_162, %c22_163], %634 {strides = array<i32>} : memref<2x8x44xf32, #tpu.memory_space<vmem>>, vector<1x8x4xf32>,
    %635 = arith.mulf %594, %471 : vector<8x3xf32>
    %636 = arith.addf %635, %600 : vector<8x3xf32>
    %c1_164 = arith.constant 1 : index
    %c0_165 = arith.constant 0 : index
    %c26_166 = arith.constant 26 : index
    %637 = vector.load %arg8[%c1_164, %c0_165, %c26_166] : memref<2x8x44xf32, #tpu.memory_space<vmem>>, vector<1x8x3xf32>
    %638 = vector.shape_cast %637 : vector<1x8x3xf32> to vector<8x3xf32>
    %639 = vector.shape_cast %636 : vector<8x3xf32> to vector<1x8x3xf32>
    tpu.vector_store %arg8[%c1_164, %c0_165, %c26_166], %639 {strides = array<i32>} : memref<2x8x44xf32, #tpu.memory_space<vmem>>, vector<1x8x3xf32>,
    %c1_167 = arith.constant 1 : index
    %c0_168 = arith.constant 0 : index
    %c29_169 = arith.constant 29 : index
    %640 = vector.load %arg8[%c1_167, %c0_168, %c29_169] : memref<2x8x44xf32, #tpu.memory_space<vmem>>, vector<1x8x4xf32>
    %641 = vector.shape_cast %640 : vector<1x8x4xf32> to vector<8x4xf32>
    %642 = vector.shape_cast %457 : vector<8x4xf32> to vector<1x8x4xf32>
    tpu.vector_store %arg8[%c1_167, %c0_168, %c29_169], %642 {strides = array<i32>} : memref<2x8x44xf32, #tpu.memory_space<vmem>>, vector<1x8x4xf32>,
    %643 = arith.mulf %589, %465 : vector<8x4xf32>
    %644 = arith.addf %643, %597 : vector<8x4xf32>
    %c1_170 = arith.constant 1 : index
    %c0_171 = arith.constant 0 : index
    %c33_172 = arith.constant 33 : index
    %645 = vector.load %arg8[%c1_170, %c0_171, %c33_172] : memref<2x8x44xf32, #tpu.memory_space<vmem>>, vector<1x8x4xf32>
    %646 = vector.shape_cast %645 : vector<1x8x4xf32> to vector<8x4xf32>
    %647 = vector.shape_cast %644 : vector<8x4xf32> to vector<1x8x4xf32>
    tpu.vector_store %arg8[%c1_170, %c0_171, %c33_172], %647 {strides = array<i32>} : memref<2x8x44xf32, #tpu.memory_space<vmem>>, vector<1x8x4xf32>,
    %648 = arith.mulf %594, %473 : vector<8x3xf32>
    %649 = arith.addf %648, %600 : vector<8x3xf32>
    %c1_173 = arith.constant 1 : index
    %c0_174 = arith.constant 0 : index
    %c37_175 = arith.constant 37 : index
    %650 = vector.load %arg8[%c1_173, %c0_174, %c37_175] : memref<2x8x44xf32, #tpu.memory_space<vmem>>, vector<1x8x3xf32>
    %651 = vector.shape_cast %650 : vector<1x8x3xf32> to vector<8x3xf32>
    %652 = vector.shape_cast %649 : vector<8x3xf32> to vector<1x8x3xf32>
    tpu.vector_store %arg8[%c1_173, %c0_174, %c37_175], %652 {strides = array<i32>} : memref<2x8x44xf32, #tpu.memory_space<vmem>>, vector<1x8x3xf32>,
    %c1_176 = arith.constant 1 : index
    %c0_177 = arith.constant 0 : index
    %c40_178 = arith.constant 40 : index
    %653 = vector.load %arg8[%c1_176, %c0_177, %c40_178] : memref<2x8x44xf32, #tpu.memory_space<vmem>>, vector<1x8x4xf32>
    %654 = vector.shape_cast %653 : vector<1x8x4xf32> to vector<8x4xf32>
    %655 = vector.shape_cast %457 : vector<8x4xf32> to vector<1x8x4xf32>
    tpu.vector_store %arg8[%c1_176, %c0_177, %c40_178], %655 {strides = array<i32>} : memref<2x8x44xf32, #tpu.memory_space<vmem>>, vector<1x8x4xf32>,
    return
  }
  func.func @transform_0(%arg0: i32, %arg1: memref<2xi32, #tpu.memory_space<smem>>) -> (i32, i32, i32) {
    %c0_i32 = arith.constant 0 : i32
    %c0_i32_0 = arith.constant 0 : i32
    %c0_i32_1 = arith.constant 0 : i32
    return %arg0, %c0_i32, %c0_i32_0 : i32, i32, i32
  }
  func.func @transform_1(%arg0: i32, %arg1: memref<2xi32, #tpu.memory_space<smem>>) -> (i32, i32, i32) {
    %c0_i32 = arith.constant 0 : i32
    %c0_i32_0 = arith.constant 0 : i32
    %c0_i32_1 = arith.constant 0 : i32
    return %arg0, %c0_i32, %c0_i32_0 : i32, i32, i32
  }
  func.func @transform_2(%arg0: i32, %arg1: memref<2xi32, #tpu.memory_space<smem>>) -> (i32, i32, i32) {
    %c0_i32 = arith.constant 0 : i32
    %c0_i32_0 = arith.constant 0 : i32
    %c0_i32_1 = arith.constant 0 : i32
    return %arg0, %c0_i32, %c0_i32_0 : i32, i32, i32
  }
  func.func @transform_3(%arg0: i32, %arg1: memref<2xi32, #tpu.memory_space<smem>>) -> (i32, i32) {
    %c0_i32 = arith.constant 0 : i32
    %c0_i32_0 = arith.constant 0 : i32
    %c0_i32_1 = arith.constant 0 : i32
    return %c0_i32, %c0_i32_0 : i32, i32
  }
  func.func @transform_4(%arg0: i32, %arg1: memref<2xi32, #tpu.memory_space<smem>>) -> (i32, i32) {
    %c0_i32 = arith.constant 0 : i32
    %c0_i32_0 = arith.constant 0 : i32
    %c0_i32_1 = arith.constant 0 : i32
    return %c0_i32, %c0_i32_0 : i32, i32
  }
  func.func @transform_5(%arg0: i32, %arg1: memref<2xi32, #tpu.memory_space<smem>>) -> (i32, i32, i32) {
    %c0_i32 = arith.constant 0 : i32
    %c0_i32_0 = arith.constant 0 : i32
    %c0_i32_1 = arith.constant 0 : i32
    return %arg0, %c0_i32, %c0_i32_0 : i32, i32, i32
  }
  func.func @transform_6(%arg0: i32, %arg1: memref<2xi32, #tpu.memory_space<smem>>) -> (i32, i32, i32) {
    %c0_i32 = arith.constant 0 : i32
    %c0_i32_0 = arith.constant 0 : i32
    %c0_i32_1 = arith.constant 0 : i32
    return %arg0, %c0_i32, %c0_i32_0 : i32, i32, i32
  }
}

</mosaic_0001>

<bundles_post_ra>
// kernel: tpu_custom_call.1
= control target key start
LH: loop header
LB: loop body
LE: loop exit
PB: predicated region body
PF: predicated region fallthrough
CT: control target
= control target key end

     0   :  { %s1597_s27 = smov [#allocation3]   ;;  %s2106_s0 = inlined_call_operand.vmem [shape: s32[2], index: 0, kind: input, shape index: {}]   ;;  %s2107_s1 = inlined_call_operand.vmem [shape: f32[2,3,16], index: 1, kind: input, shape index: {}]   ;;  %s2108_s2 = inlined_call_operand.vmem [shape: f32[2,16,3], index: 2, kind: input, shape index: {}]   ;;  %s2109_s3 = inlined_call_operand.vmem [shape: f32[2,16,4], index: 3, kind: input, shape index: {}]   ;;  %s2110_s4 = inlined_call_operand.vmem [shape: f32[1,7], index: 4, kind: input, shape index: {}]   ;;  %s2111_s5 = inlined_call_operand.vmem [shape: f32[1,7], index: 5, kind: input, shape index: {}]   ;;  %s2112_s6 = inlined_call_operand.vmem [shape: f32[2,8,3], index: 6, kind: output, shape index: {0}]   ;;  %s2113_s7 = inlined_call_operand.hbm [shape: f32[2,8,44], index: 7, kind: output, shape index: {1}]  }
   0x1   :  { %s14_s26 = sshll.u32 %s2106_s0, 4  ;;  %s15_s26 = int_to_ptr.vmem [resolvable:$true] %s14_s26 }
   0x2   :  { %17 = dma.vmem_to_smem %s15_s26, 16, %s1597_s27, [#allocation2] }
   0x3   :  { %1573 = dma.done.wait [#allocation2], 16 }
   0x4   :  { %1574 = vsyncadd [#allocation2], 4294967280 }
   0x5   :  { %20 = sfence }
   0x6   :  { %21 = vsyncpa [#allocation5], 0  ;;  %v1661_v0 = vld [vmem:[%s2107_s1] sm:$0x7]  ;;  %v1666_v1 = vld [vmem:[%s2107_s1 + $0x4] sm:$0x7]  ;;  %v34_v2 = vlaneseq }
   0x7   :  { %s41_s9 = sld [smem:[#allocation3]]  ;;  %v1671_v10 = vmov 0.0   ;;  %v1675_v11 = vmov 1e+10   ;;  %v1677_v12 = vmov 1e+10  }
   0x8   :  { %v1668_v3 = vand.u32 127, %v34_v2  ;;  %v38_v4 = vshrl.u32 %v34_v2, 7  ;;  %s1329_s0 = sld [smem:[#allocation3 + $0x1]]  ;;  %s1679_s1 = smov 0  }
   0xa   :  { %v36_v5 = vcvt.s32.f32 %v1668_v3  ;;  %vm39_vm0 = vcmp.eq.s32.totalorder %v38_v4, 0  ;;  %vm44_vm1 = vcmp.eq.s32.totalorder %v38_v4, 1 }
   0xd   :  { %v42_v6 = vstv %s41_s9 }
   0xe   :  { %v43_v7 = vsel %vm39_vm0, %v42_v6, 0  ;;  %v47_v8 = vstv %s1329_s0 }
   0xf   :  { %v48_v9 = vsel %vm44_vm1, %v47_v8, %v43_v7  }
  0x10 LB: > { %v59_v13 = vstv %s1595_s1  ;;  %v65_v14 = vperm.slane %v1583_v9, 0  ;;  %v61_v15 = vcvt.s32.f32 %v1583_v9  ;;  %v66_v16 = vperm.slane %v1583_v9, 1  ;;  %s54_s1 = sadd.s32 1, %s1595_s1   ;;  %s1595_s1 = sphi %s1679_s1, %s54_s1   ;;  %v1591_v12 = vphi %v1677_v12, %v100_v12   ;;  %v1587_v11 = vphi %v1675_v11, %v101_v11   ;;  %v1583_v9 = vphi %v48_v9, %v135_v9   ;;  %v1579_v10 = vphi %v1671_v10, %v2115_v10  }
  0x11   : > { %vm60_vm2 = vcmp.eq.s32.totalorder %v1668_v3, %v59_v13  ;;  %v1598_v18 = vmov 0.0   ;;  %vm75_vm5 = vcmask 124928   ;;  %vm104_vm6 = vcmask 1041409   ;;  %p51_p0 = scmp.ge.s32.totalorder %s54_s1, 8  }
  0x12   : > { %vm67_vm3 = vcmp.eq.s32.totalorder %v1668_v3, %v65_v14  ;;  %v1691_v10 = vsel %vm60_vm2, %v61_v15, %v1579_v10   ;;  %vm68_vm4 = vcmp.eq.s32.totalorder %v1668_v3, %v66_v16  ;;  %vm107_vm7 = vcmask 123904   ;;  %v173_v6 = vld [vmem:[%s2109_s3 + $0x8] sm:$0xff] (%p51_p0)  ;;  %v172_v8 = vld [vmem:[%s2109_s3] sm:$0xff] (%p51_p0) }
  0x13   : > { %v2114_v17 = vmov %v1691_v10  ;;  %v1330_v19 = vsel %vm67_vm3, 1.0, %v1598_v18  ;;  %v1331_v21 = vsel %vm68_vm4, 1.0, %v1598_v18  ;;  %v1599_v2 = vmov (%p51_p0), 0   ;;  %v171_v7 = vld [vmem:[%s2108_s2 + $0x8] sm:$0xff] (%p51_p0)  ;;  %334 = vmatpush.msra.mxu0 (%p51_p0), %v173_v6 }
  0x14   : > { %v73_v20 = vmul.f32 %v1330_v19, %v1661_v0  ;;  %v74_v23 = vmul.f32 %v1331_v21, %v1666_v1  ;;  %v2115_v10 = vmov %v2114_v17  ;;  %366 = vmatpush.msra.mxu1 (%p51_p0), %v171_v7  ;;  %vm184_vm11 = vcmask (%p51_p0), 130048  }
  0x15   :  { %335 = vmatpush.msra.mxu0 (%p51_p0), %v172_v8  ;;  %v193_v10 = vperm.slane (%p51_p0), %v1661_v0, 2  ;;  %v1600_v13 = vmov (%p51_p0), 0.0   ;;  %v188_v19 = vperm.slane (%p51_p0), %v1661_v0, 1  ;;  %vm198_vm13 = vcmask (%p51_p0), 7168  }
  0x16   : > { %v76_v22 = vsel %vm75_vm5, %v73_v20, 0.0  ;;  %v79_v24 = vsel %vm75_vm5, %v74_v23, 0.0  ;;  %vm200_vm14 = vcmask (%p51_p0), 15360   ;;  %vm436_vm15 = vcmask (%p51_p0), 23552  }
  0x17   : > { %77 = vadd.xlane.f32.xlu0 %v76_v22 }
  0x1f   : > { %80 = vadd.xlane.f32.xlu0 %v79_v24 }
  0x48   :  { %136 = vxpose.xlu0.b32.start.end [1/1] (short) (narrow) (%p51_p0), %v2114_v17, 8 }
  0x8a   : > { %v78_v25 = vpop.xlane.xlu0 %77 }
  0x8b   : > { %v82_v26 = vsub.f32 %v1661_v0, %v78_v25 }
  0x8d   : > { %v84_v27 = vmul.f32 %v82_v26, %v82_v26 }
  0x8f   : > { %v86_v28 = vsel %vm75_vm5, %v84_v27, 0.0 }
  0x90   : > { %v87_v29 = vrot.slane %v86_v28, 4 }
  0x92   : > { %v88_v30 = vadd.f32 %v87_v29, %v86_v28  ;;  %v81_v31 = vpop.xlane.xlu0 %80 }
  0x93   : > { %v83_v32 = vsub.f32 %v1666_v1, %v81_v31 }
  0x94   : > { %v89_v33 = vrot.slane %v88_v30, 2 }
  0x95   : > { %v85_v34 = vmul.f32 %v83_v32, %v83_v32 }
  0x96   : > { %v90_v36 = vadd.f32 %v89_v33, %v88_v30 }
  0x97   : > { %v93_v35 = vsel %vm75_vm5, %v85_v34, 0.0 }
  0x98   : > { %v94_v37 = vrot.slane %v93_v35, 4  ;;  %v91_v39 = vrot.slane %v90_v36, 1 }
  0x9a   : > { %v95_v38 = vadd.f32 %v94_v37, %v93_v35  ;;  %v92_v43 = vadd.f32 %v91_v39, %v90_v36 }
  0x9c   : > { %v96_v40 = vrot.slane %v95_v38, 2  ;;  %v100_v12 = vmin.f32 %v1591_v12, %v92_v43  }
  0x9e   : > { %v97_v41 = vadd.f32 %v96_v40, %v95_v38 }
  0xa0   : > { %v98_v42 = vrot.slane %v97_v41, 1 }
  0xa2   : > { %v99_v44 = vadd.f32 %v98_v42, %v97_v41  ;;  %v1601_v41 = vmov (%p51_p0), 1  }
  0xa3   :  { %1502 = vset.pattern.permute.xlu2 (%p51_p0), %v1601_v41 }
  0xa4   : > { %v101_v11 = vmin.f32 %v1587_v11, %v99_v44  }
  0xa6   : > { %v105_v45 = vsel %vm104_vm6, %v101_v11, %v100_v12 }
  0xa7   : > { %v108_v46 = vsel %vm107_vm7, %v105_v45, -inf }
  0xa8   : > { %109 = vmax.xlane.f32.xlu1 %v108_v46  ;;  %v1350_v46 = vld [vmem:[%s2109_s3 + $0x18] sm:$0xff] (%p51_p0) }
  0xa9   :  { %900 = vmatpush.msra.mxu2 (%p51_p0), %v1350_v46 }
  0xaf   :  { %1501 = vset.pattern.permute.xlu0 (%p51_p0), %v1599_v2 }
  0xec   :  { %v1717_v4 = vpop.trf.xlu0 (%p51_p0) }
  0xed   :  { %176 = vperm.xlu0 (%p51_p0), %1501, %v1717_v4  }
  0xf5   :  { %1503 = vset.pattern.permute.xlu0 (%p51_p0), %v1601_v41 }
 0x11b   : > { %v110_v47 = vpop.xlane.xlu1 %109 }
 0x11c   : > { %v112_v48 = vrot.slane %v110_v47, 1  ;;  %vm115_vm8 = vcmp.ge.f32.partialorder %v100_v12, %v110_v47  ;;  %v1348_v47 = vld [vmem:[%s2108_s2 + $0x18] sm:$0xff] (%p51_p0) }
 0x11d   : > { %v117_v51 = vsel %vm115_vm8, %v1668_v3, 16  ;;  %932 = vmatpush.msra.mxu3 (%p51_p0), %v1348_v47 }
 0x11e   : > { %vm116_vm9 = vcmp.ge.f32.partialorder %v101_v11, %v112_v48  ;;  %v182_v11 = vperm.slane (%p51_p0), %v1661_v0, 0  ;;  %v1349_v48 = vld [vmem:[%s2109_s3 + $0x10] sm:$0xff] (%p51_p0) }
 0x11f   : > { %v118_v49 = vsel %vm116_vm9, %v1668_v3, 16  ;;  %901 = vmatpush.msra.mxu2 (%p51_p0), %v1349_v48 }
 0x120   : > { %v119_v50 = vrot.slane %v118_v49, 7  ;;  %v1347_v49 = vld [vmem:[%s2108_s2 + $0x10] sm:$0xff] (%p51_p0) }
 0x121   :  { %933 = vmatpush.msra.mxu3 (%p51_p0), %v1347_v49 }
 0x122   : > { %v120_v52 = vsel %vm104_vm6, %v119_v50, %v117_v51 }
 0x123   : > { %v121_v53 = vsel %vm107_vm7, %v120_v52, 2147483647 }
 0x124   : > { %v123_v54 = vshra.s32 %v121_v53, 16  ;;  %v122_v56 = vand.u32 65535, %v121_v53 }
 0x126   : > { %v125_v55 = vcvt.s32.f32 %v123_v54  ;;  %v124_v58 = vcvt.s32.f32 %v122_v56 }
 0x128   : > { %126 = vmin.xlane.f32.xlu1 %v125_v55 }
 0x15f   :  { %v177_v12 = vpop.permute.xlu0 (%p51_p0), %176 }
 0x160   :  { %vm179_vm12 = vcmp.eq.f32.partialorder (%p51_p0), %v36_v5, %v177_v12 }
 0x161   :  { %v1332_v14 = vsel (%p51_p0), %vm179_vm12, 1.0, %v1600_v13 }
 0x162   :  { %1337 = vmatmul.msk.f32.vlgmr.msra.gmra.mxu0 (%p51_p0), %vm184_vm11, %v1332_v14  ;;  %v194_v15 = vmul.f32 (%p51_p0), %v1332_v14, %v193_v10  ;;  %v183_v16 = vmul.f32 (%p51_p0), %v1332_v14, %v182_v11  ;;  %v189_v20 = vmul.f32 (%p51_p0), %v1332_v14, %v188_v19 }
 0x164   :  { %v195_v17 = vsel (%p51_p0), %vm184_vm11, %v194_v15, 0.0  ;;  %v185_v18 = vsel (%p51_p0), %vm184_vm11, %v183_v16, 0.0  ;;  %v190_v21 = vsel (%p51_p0), %vm184_vm11, %v189_v20, 0.0 }
 0x165   :  { %186 = vadd.xlane.f32.xlu1 (%p51_p0), %v185_v18 }
 0x16d   :  { %191 = vadd.xlane.f32.xlu1 (%p51_p0), %v190_v21 }
 0x19b   : > { %v127_v57 = vpop.xlane.xlu1 %126 }
 0x19c   : > { %vm128_vm10 = vcmp.eq.f32.partialorder %v125_v55, %v127_v57  ;;  %v133_v60 = vcvt.f32.s32 %v127_v57 }
 0x19d   : > { %v129_v59 = vsel %vm128_vm10, %v124_v58, inf  ;;  %v761_v58 = vperm.slane (%p51_p0), %v1666_v1, 2 }
 0x19e   : > { %130 = vmin.xlane.f32.xlu2 %v129_v59  ;;  %v134_v62 = vshll.u32 %v133_v60, 16 }
 0x1a6   :  { %196 = vadd.xlane.f32.xlu2 (%p51_p0), %v195_v17 }
 0x1d8   :  { %v187_v22 = vpop.xlane.xlu1 (%p51_p0), %186 }
 0x1d9   :  { %v202_v24 = vsub.f32 (%p51_p0), %v187_v22, %v182_v11 }
 0x1db   :  { %v203_v30 = vmul.f32 (%p51_p0), %v202_v24, %v202_v24 }
 0x1e0   :  { %v192_v26 = vpop.xlane.xlu1 (%p51_p0), %191 }
 0x1e1   :  { %v199_v28 = vsel (%p51_p0), %vm198_vm13, %v187_v22, %v192_v26  ;;  %v204_v29 = vsub.f32 (%p51_p0), %v192_v26, %v188_v19 }
 0x1e3   :  { %v205_v31 = vmul.f32 (%p51_p0), %v204_v29, %v204_v29 }
 0x1e5   :  { %v206_v33 = vadd.f32 (%p51_p0), %v205_v31, %v203_v30 }
 0x210   :  { %53 = sbr.rel (!%p51_p0) target bundleno = 16 (0x10), region = 59 }
 0x211   : > { %v131_v61 = vpop.xlane.xlu2 %130 }
 0x212   : > { %v132_v63 = vcvt.f32.s32 %v131_v61 }
 0x214   : > { %v135_v9 = vadd.s32 %v134_v62, %v132_v63  }
 0x215   :  { %v170_v9 = vld [vmem:[%s2108_s2] sm:$0xff] }
 0x216   :  { %367 = vmatpush.msra.mxu1 %v170_v9 }
 0x217   :  { %1342 = vmatmul.msk.f32.vlgmr.msra.gmra.mxu1 %vm184_vm11, %v1332_v14 }
 0x219   :  { %v197_v23 = vpop.xlane.xlu2 %196 }
 0x21a   :  { %v207_v27 = vsub.f32 %v197_v23, %v193_v10  ;;  %v1745_v0 = vsel %vm200_vm14, %v199_v28, %v197_v23  ;;  %v756_v10 = vperm.slane %v1666_v1, 1 }
 0x21b   :  { %645 = vst.msk [vmem:[%s2112_s6] sm:$0xff] %vm436_vm15, %v1745_v0 }
 0x21c   :  { %v208_v32 = vmul.f32 %v207_v27, %v207_v27 }
 0x21e   :  { %v209_v34 = vadd.f32 %v208_v32, %v206_v33 }
 0x220   :  { %v210_v35 = vsel %vm184_vm11, %v209_v34, inf }
 0x221   :  { %211 = vmin.xlane.f32.xlu2 %v210_v35 }
 0x294   :  { %v369_v25 = vpop.f32.mrf.mxu1  ;;  %v212_v36 = vpop.xlane.xlu2 %211 }
 0x295   :  { %vm213_vm0 = vcmp.le.f32.partialorder %v209_v34, %v212_v36 }
 0x296   :  { %v214_v37 = vsel %vm213_vm0, %v1668_v3, 16 }
 0x297   :  { %v215_v38 = vsel %vm184_vm11, %v214_v37, 2147483647 }
 0x298   :  { %v217_v39 = vshra.s32 %v215_v38, 16  ;;  %v216_v42 = vand.u32 65535, %v215_v38 }
 0x29a   :  { %v219_v40 = vcvt.s32.f32 %v217_v39  ;;  %v218_v44 = vcvt.s32.f32 %v216_v42 }
 0x29c   :  { %220 = vmin.xlane.f32.xlu1 %v219_v40 }
 0x30f   :  { %v221_v43 = vpop.xlane.xlu1 %220 }
 0x310   :  { %vm222_vm1 = vcmp.eq.f32.partialorder %v219_v40, %v221_v43  ;;  %v227_v50 = vcvt.f32.s32 %v221_v43 }
 0x311   :  { %v223_v45 = vsel %vm222_vm1, %v218_v44, inf }
 0x312   :  { %224 = vmin.xlane.f32.xlu2 %v223_v45  ;;  %v228_v52 = vshll.u32 %v227_v50, 16 }
 0x32a   :  { %745 = vperm.xlu2 %1502, %v1717_v4  }
 0x385   :  { %v225_v51 = vpop.xlane.xlu2 %224 }
 0x386   :  { %v226_v53 = vcvt.f32.s32 %v225_v51 }
 0x388   :  { %v229_v54 = vadd.s32 %v228_v52, %v226_v53 }
 0x38a   :  { %vm230_vm2 = vcmp.eq.s32.totalorder %v1668_v3, %v229_v54 }
 0x38b   :  { %v1333_v55 = vsel %vm230_vm2, 1.0, %v1600_v13  ;;  %v233_v56 = vsel %vm230_vm2, 1e+30, %v209_v34 }
 0x38c   :  { %1338 = vmatmul.msk.f32.gmra.mxu0 %vm184_vm11, %v1333_v55  ;;  %1343 = vmatmul.msk.f32.gmra.mxu1 %vm184_vm11, %v1333_v55  ;;  %v234_v57 = vsel %vm184_vm11, %v233_v56, inf }
 0x38d   :  { %235 = vmin.xlane.f32.xlu1 %v234_v57  ;;  %v746_v59 = vpop.permute.xlu2 %745 }
 0x38e   :  { %vm748_vm3 = vcmp.eq.f32.partialorder %v36_v5, %v746_v59  ;;  %v751_v5 = vperm.slane %v1666_v1, 0 }
 0x38f   :  { %v1351_v60 = vsel %vm748_vm3, 1.0, %v1600_v13 }
 0x390   :  { %1356 = vmatmul.msk.f32.vlgmr.msra.gmra.mxu2 %vm184_vm11, %v1351_v60  ;;  %1361 = vmatmul.msk.f32.vlgmr.msra.gmra.mxu3 %vm184_vm11, %v1351_v60  ;;  %v762_v61 = vmul.f32 %v1351_v60, %v761_v58  ;;  %v752_v8 = vmul.f32 %v1351_v60, %v751_v5  ;;  %v757_v12 = vmul.f32 %v1351_v60, %v756_v10 }
 0x392   :  { %v763_v62 = vsel %vm184_vm11, %v762_v61, 0.0  ;;  %v753_v9 = vsel %vm184_vm11, %v752_v8, 0.0  ;;  %v758_v14 = vsel %vm184_vm11, %v757_v12, 0.0 }
 0x393   :  { %764 = vadd.xlane.f32.xlu2 %v763_v62 }
 0x400   :  { %v236_v63 = vpop.xlane.xlu1 %235 }
 0x401   :  { %vm237_vm4 = vcmp.le.f32.partialorder %v233_v56, %v236_v63 }
 0x402   :  { %v238_v2 = vsel %vm237_vm4, %v1668_v3, 16 }
 0x403   :  { %v239_v4 = vsel %vm184_vm11, %v238_v2, 2147483647 }
 0x404   :  { %v241_v6 = vshra.s32 %v239_v4, 16  ;;  %v240_v15 = vand.u32 65535, %v239_v4 }
 0x406   :  { %v243_v7 = vcvt.s32.f32 %v241_v6  ;;  %v242_v17 = vcvt.s32.f32 %v240_v15  ;;  %v765_v20 = vpop.xlane.xlu2 %764 }
 0x407   :  { %v773_v23 = vsub.f32 %v765_v20, %v761_v58 }
 0x408   :  { %244 = vmin.xlane.f32.xlu1 %v243_v7 }
 0x409   :  { %v774_v28 = vmul.f32 %v773_v23, %v773_v23 }
 0x410   :  { %754 = vadd.xlane.f32.xlu1 %v753_v9 }
 0x413   :  { %v935_v11 = vpop.f32.mrf.mxu3 }
 0x418   :  { %759 = vadd.xlane.f32.xlu1 %v758_v14 }
 0x47b   :  { %v245_v16 = vpop.xlane.xlu1 %244 }
 0x47c   :  { %vm246_vm5 = vcmp.eq.f32.partialorder %v243_v7, %v245_v16  ;;  %v251_v32 = vcvt.f32.s32 %v245_v16 }
 0x47d   :  { %v247_v18 = vsel %vm246_vm5, %v242_v17, inf }
 0x47e   :  { %248 = vmin.xlane.f32.xlu1 %v247_v18  ;;  %v252_v34 = vshll.u32 %v251_v32, 16 }
 0x483   :  { %v755_v19 = vpop.xlane.xlu1 %754 }
 0x484   :  { %v768_v21 = vsub.f32 %v755_v19, %v751_v5 }
 0x486   :  { %v769_v26 = vmul.f32 %v768_v21, %v768_v21 }
 0x48b   :  { %v760_v22 = vpop.xlane.xlu1 %759 }
 0x48c   :  { %v766_v24 = vsel %vm198_vm13, %v755_v19, %v760_v22  ;;  %v770_v1 = vsub.f32 %v760_v22, %v756_v10 }
 0x48d   :  { %v1788_v25 = vsel %vm200_vm14, %v766_v24, %v765_v20 }
 0x48e   :  { %v771_v27 = vmul.f32 %v770_v1, %v770_v1  ;;  %1366 = vst.msk [vmem:[%s2112_s6 + $0x8] sm:$0xff] %vm436_vm15, %v1788_v25 }
 0x490   :  { %v772_v29 = vadd.f32 %v771_v27, %v769_v26 }
 0x492   :  { %v775_v30 = vadd.f32 %v774_v28, %v772_v29  ;;  %v371_v28 = vpop.f32.mrf.mxu1 }
 0x494   :  { %v776_v31 = vsel %vm184_vm11, %v775_v30, inf }
 0x495   :  { %777 = vmin.xlane.f32.xlu1 %v776_v31 }
 0x4f1   :  { %v249_v33 = vpop.xlane.xlu1 %248 }
 0x4f2   :  { %v250_v35 = vcvt.f32.s32 %v249_v33 }
 0x4f4   :  { %v253_v36 = vadd.s32 %v252_v34, %v250_v35 }
 0x4f6   :  { %vm254_vm6 = vcmp.eq.s32.totalorder %v1668_v3, %v253_v36 }
 0x4f7   :  { %v1334_v37 = vsel %vm254_vm6, 1.0, %v1600_v13  ;;  %v257_v38 = vsel %vm254_vm6, 1e+30, %v233_v56  ;;  %vm391_vm6 = vcmask 31744  }
 0x4f8   :  { %1339 = vmatmul.msk.f32.gmra.mxu0 %vm184_vm11, %v1334_v37  ;;  %1344 = vmatmul.msk.f32.gmra.mxu1 %vm184_vm11, %v1334_v37  ;;  %v258_v39 = vsel %vm184_vm11, %v257_v38, inf }
 0x4f9   :  { %259 = vmin.xlane.f32.xlu1 %v258_v39 }
 0x508   :  { %v778_v40 = vpop.xlane.xlu1 %777 }
 0x509   :  { %vm779_vm7 = vcmp.le.f32.partialorder %v775_v30, %v778_v40 }
 0x50a   :  { %v780_v41 = vsel %vm779_vm7, %v1668_v3, 16 }
 0x50b   :  { %v781_v42 = vsel %vm184_vm11, %v780_v41, 2147483647 }
 0x50c   :  { %v783_v43 = vshra.s32 %v781_v42, 16  ;;  %v782_v50 = vand.u32 65535, %v781_v42 }
 0x50e   :  { %v785_v44 = vcvt.s32.f32 %v783_v43  ;;  %v784_v52 = vcvt.s32.f32 %v782_v50 }
 0x510   :  { %786 = vmin.xlane.f32.xlu1 %v785_v44 }
 0x56c   :  { %v260_v45 = vpop.xlane.xlu1 %259 }
 0x56d   :  { %vm261_vm8 = vcmp.le.f32.partialorder %v257_v38, %v260_v45 }
 0x56e   :  { %v262_v46 = vsel %vm261_vm8, %v1668_v3, 16 }
 0x56f   :  { %v263_v47 = vsel %vm184_vm11, %v262_v46, 2147483647 }
 0x570   :  { %v265_v48 = vshra.s32 %v263_v47, 16  ;;  %v264_v54 = vand.u32 65535, %v263_v47 }
 0x572   :  { %v267_v49 = vcvt.s32.f32 %v265_v48  ;;  %v266_v56 = vcvt.s32.f32 %v264_v54 }
 0x574   :  { %268 = vmin.xlane.f32.xlu1 %v267_v49 }
 0x575   :  { %v1819_v29 = vpop.f32.mrf.mxu1 }
 0x583   :  { %v787_v51 = vpop.xlane.xlu1 %786 }
 0x584   :  { %vm788_vm9 = vcmp.eq.f32.partialorder %v785_v44, %v787_v51  ;;  %v793_v58 = vcvt.f32.s32 %v787_v51  ;;  %v1838_v51 = vpop.f32.mrf.mxu0 }
 0x585   :  { %v789_v53 = vsel %vm788_vm9, %v784_v52, inf }
 0x586   :  { %790 = vmin.xlane.f32.xlu2 %v789_v53  ;;  %v794_v60 = vshll.u32 %v793_v58, 16 }
 0x58c   :  { %v340_v52 = vpop.f32.mrf.mxu0 }
 0x594   :  { %v343_v58 = vpop.f32.mrf.mxu0 }
 0x5e7   :  { %v269_v55 = vpop.xlane.xlu1 %268 }
 0x5e8   :  { %vm270_vm10 = vcmp.eq.f32.partialorder %v267_v49, %v269_v55  ;;  %v275_v6 = vcvt.f32.s32 %v269_v55 }
 0x5e9   :  { %v271_v57 = vsel %vm270_vm10, %v266_v56, inf }
 0x5ea   :  { %272 = vmin.xlane.f32.xlu1 %v271_v57  ;;  %v276_v5 = vshll.u32 %v275_v6, 16 }
 0x5f9   :  { %v791_v59 = vpop.xlane.xlu2 %790 }
 0x5fa   :  { %v792_v61 = vcvt.f32.s32 %v791_v59  ;;  %v1844_v59 = vsub.f32 %v340_v52, %v1838_v51 }
 0x5fc   :  { %v795_v62 = vadd.s32 %v794_v60, %v792_v61  ;;  %v392_v60 = vsel %vm391_vm6, %v1844_v59, 0.0 }
 0x5fe   :  { %vm796_vm12 = vcmp.eq.s32.totalorder %v1668_v3, %v795_v62 }
 0x5ff   :  { %v1352_v63 = vsel %vm796_vm12, 1.0, %v1600_v13  ;;  %v799_v2 = vsel %vm796_vm12, 1e+30, %v775_v30 }
 0x600   :  { %1357 = vmatmul.msk.f32.gmra.mxu2 %vm184_vm11, %v1352_v63  ;;  %1362 = vmatmul.msk.f32.gmra.mxu3 %vm184_vm11, %v1352_v63  ;;  %v800_v4 = vsel %vm184_vm11, %v799_v2, inf }
 0x601   :  { %801 = vmin.xlane.f32.xlu2 %v800_v4 }
 0x65d   :  { %v273_v7 = vpop.xlane.xlu1 %272 }
 0x65e   :  { %v274_v8 = vcvt.f32.s32 %v273_v7 }
 0x660   :  { %v277_v9 = vadd.s32 %v276_v5, %v274_v8 }
 0x662   :  { %vm278_vm13 = vcmp.eq.s32.totalorder %v1668_v3, %v277_v9  ;;  %v1859_v9 = vsub.f32 %v343_v58, %v1838_v51 }
 0x663   :  { %v1335_v10 = vsel %vm278_vm13, 1.0, %v1600_v13  ;;  %v281_v11 = vsel %vm278_vm13, 1e+30, %v257_v38 }
 0x664   :  { %1340 = vmatmul.msk.f32.gmra.mxu0 %vm184_vm11, %v1335_v10  ;;  %1345 = vmatmul.msk.f32.gmra.mxu1 %vm184_vm11, %v1335_v10  ;;  %v282_v12 = vsel %vm184_vm11, %v281_v11, inf }
 0x665   :  { %283 = vmin.xlane.f32.xlu1 %v282_v12  ;;  %v403_v12 = vsel %vm391_vm6, %v1859_v9, 0.0 }
 0x674   :  { %v802_v14 = vpop.xlane.xlu2 %801 }
 0x675   :  { %vm803_vm14 = vcmp.le.f32.partialorder %v799_v2, %v802_v14 }
 0x676   :  { %v804_v15 = vsel %vm803_vm14, %v1668_v3, 16 }
 0x677   :  { %v805_v16 = vsel %vm184_vm11, %v804_v15, 2147483647 }
 0x678   :  { %v807_v17 = vshra.s32 %v805_v16, 16  ;;  %v806_v24 = vand.u32 65535, %v805_v16  ;;  %v1865_v16 = vsub.f32 %v1819_v29, %v1745_v0 }
 0x67a   :  { %v809_v18 = vcvt.s32.f32 %v807_v17  ;;  %v808_v26 = vcvt.s32.f32 %v806_v24 }
 0x67c   :  { %810 = vmin.xlane.f32.xlu2 %v809_v18 }
 0x6d8   :  { %v284_v19 = vpop.xlane.xlu1 %283 }
 0x6d9   :  { %vm285_vm0 = vcmp.le.f32.partialorder %v281_v11, %v284_v19  ;;  %v448_v19 = vsel %vm436_vm15, %v1865_v16, 0.0 }
 0x6da   :  { %v286_v20 = vsel %vm285_vm0, %v1668_v3, 16 }
 0x6db   :  { %v287_v21 = vsel %vm184_vm11, %v286_v20, 2147483647 }
 0x6dc   :  { %v289_v22 = vshra.s32 %v287_v21, 16  ;;  %v288_v30 = vand.u32 65535, %v287_v21 }
 0x6de   :  { %v291_v23 = vcvt.s32.f32 %v289_v22  ;;  %v290_v32 = vcvt.s32.f32 %v288_v30 }
 0x6e0   :  { %292 = vmin.xlane.f32.xlu1 %v291_v23 }
 0x6e1   :  { %v377_v34 = vpop.f32.mrf.mxu1  ;;  %v346_v61 = vpop.f32.mrf.mxu0 }
 0x6e2   :  { %v1822_v35 = vsub.f32 %v377_v34, %v1745_v0  ;;  %v1849_v62 = vsub.f32 %v346_v61, %v1838_v51 }
 0x6e4   :  { %v459_v36 = vsel %vm436_vm15, %v1822_v35, 0.0  ;;  %v414_v63 = vsel %vm391_vm6, %v1849_v62, 0.0 }
 0x6ef   :  { %v811_v1 = vpop.xlane.xlu2 %810 }
 0x6f0   :  { %vm812_vm1 = vcmp.eq.f32.partialorder %v809_v18, %v811_v1  ;;  %v817_v37 = vcvt.f32.s32 %v811_v1 }
 0x6f1   :  { %v813_v27 = vsel %vm812_vm1, %v808_v26, inf }
 0x6f2   :  { %814 = vmin.xlane.f32.xlu2 %v813_v27  ;;  %v818_v39 = vshll.u32 %v817_v37, 16 }
 0x753   :  { %v293_v31 = vpop.xlane.xlu1 %292 }
 0x754   :  { %vm294_vm2 = vcmp.eq.f32.partialorder %v291_v23, %v293_v31  ;;  %v299_v45 = vcvt.f32.s32 %v293_v31 }
 0x755   :  { %v295_v33 = vsel %vm294_vm2, %v290_v32, inf }
 0x756   :  { %296 = vmin.xlane.f32.xlu0 %v295_v33  ;;  %v300_v47 = vshll.u32 %v299_v45, 16 }
 0x75e   :  { %460 = vadd.xlane.f32.xlu0 %v459_v36 }
 0x765   :  { %v815_v38 = vpop.xlane.xlu2 %814 }
 0x766   :  { %v816_v40 = vcvt.f32.s32 %v815_v38 }
 0x768   :  { %v819_v41 = vadd.s32 %v818_v39, %v816_v40 }
 0x76a   :  { %vm820_vm3 = vcmp.eq.s32.totalorder %v1668_v3, %v819_v41 }
 0x76b   :  { %v1353_v42 = vsel %vm820_vm3, 1.0, %v1600_v13  ;;  %v1828_v43 = vsel %vm820_vm3, 1e+30, %v799_v2  ;;  %v1854_v2 = vsub.f32 %v371_v28, %v1745_v0 }
 0x76c   :  { %1358 = vmatmul.msk.f32.gmra.mxu2 %vm184_vm11, %v1353_v42  ;;  %1363 = vmatmul.msk.f32.gmra.mxu3 %vm184_vm11, %v1353_v42  ;;  %v824_v44 = vsel %vm184_vm11, %v1828_v43, inf }
 0x76d   :  { %825 = vmin.xlane.f32.xlu1 %v824_v44  ;;  %v437_v4 = vsel %vm436_vm15, %v1854_v2, 0.0 }
 0x7c9   :  { %v297_v46 = vpop.xlane.xlu0 %296 }
 0x7ca   :  { %v298_v48 = vcvt.f32.s32 %v297_v46 }
 0x7cc   :  { %v301_v49 = vadd.s32 %v300_v47, %v298_v48 }
 0x7ce   :  { %vm302_vm4 = vcmp.eq.s32.totalorder %v1668_v3, %v301_v49 }
 0x7cf   :  { %v1336_v50 = vsel %vm302_vm4, 1.0, %v1600_v13 }
 0x7d0   :  { %1341 = vmatmul.msk.f32.gmra.mxu0 %vm184_vm11, %v1336_v50  ;;  %1346 = vmatmul.msk.f32.gmra.mxu1 %vm184_vm11, %v1336_v50 }
 0x7d1   :  { %v461_v46 = vpop.xlane.xlu0 %460 }
 0x7e0   :  { %v826_v53 = vpop.xlane.xlu1 %825 }
 0x7e1   :  { %vm827_vm5 = vcmp.le.f32.partialorder %v1828_v43, %v826_v53  ;;  %v462_v53 = vrot.slane %v461_v46, 4 }
 0x7e2   :  { %v828_v54 = vsel %vm827_vm5, %v1668_v3, 16  ;;  %vm661_vm5 = vcmask 89144  }
 0x7e3   :  { %v829_v55 = vsel %vm184_vm11, %v828_v54, 2147483647  ;;  %v1602_v54 = vmov 224.0  }
 0x7e4   :  { %v831_v56 = vshra.s32 %v829_v55, 16  ;;  %v830_v6 = vand.u32 65535, %v829_v55  ;;  %1505 = vrcp.f32 %v1602_v54 }
 0x7e6   :  { %v833_v57 = vcvt.s32.f32 %v831_v56  ;;  %v832_v5 = vcvt.s32.f32 %v830_v6 }
 0x7e8   :  { %834 = vmin.xlane.f32.xlu2 %v833_v57 }
 0x7ea   :  { %v1506_v61 = vpop.eup %1505 }
 0x7eb   :  { %vm487_vm9 = vweird.f32 %v1506_v61 }
 0x7f0   :  { %393 = vadd.xlane.f32.xlu2 %v392_v60  ;;  %v463_v60 = vadd.f32 %v462_v53, %v461_v46  ;;  %v1898_v46 = vpop.f32.mrf.mxu2 }
 0x7f8   :  { %415 = vadd.xlane.f32.xlu2 %v414_v63 }
 0x800   :  { %438 = vadd.xlane.f32.xlu2 %v437_v4 }
 0x84d   :  { %v349_v20 = vpop.f32.mrf.mxu0  ;;  %v380_v24 = vpop.f32.mrf.mxu1 }
 0x84e   :  { %v1870_v22 = vsub.f32 %v349_v20, %v1838_v51  ;;  %v1875_v1 = vsub.f32 %v380_v24, %v1745_v0 }
 0x850   :  { %v425_v23 = vsel %vm391_vm6, %v1870_v22, 0.0  ;;  %v470_v26 = vsel %vm436_vm15, %v1875_v1, 0.0 }
 0x85b   :  { %v835_v7 = vpop.xlane.xlu2 %834 }
 0x85c   :  { %vm836_vm7 = vcmp.eq.f32.partialorder %v833_v57, %v835_v7  ;;  %v841_v27 = vcvt.f32.s32 %v835_v7 }
 0x85d   :  { %v837_v8 = vsel %vm836_vm7, %v832_v5, inf  ;;  %v464_v5 = vrot.slane %v463_v60, 2  ;;  %vm669_vm7 = vcmask 121944  }
 0x85e   :  { %838 = vmin.xlane.f32.xlu1 %v837_v8  ;;  %v842_v31 = vshll.u32 %v841_v27, 16 }
 0x863   :  { %v394_v10 = vpop.xlane.xlu2 %393 }
 0x864   :  { %v395_v11 = vrot.slane %v394_v10, 4 }
 0x866   :  { %v396_v14 = vadd.f32 %v395_v11, %v394_v10  ;;  %404 = vadd.xlane.f32.xlu1 %v403_v12  ;;  %v483_v10 = vmul.f32 224.0, %v1506_v61 }
 0x868   :  { %v397_v15 = vrot.slane %v396_v14, 2 }
 0x86a   :  { %v398_v17 = vadd.f32 %v397_v15, %v396_v14  ;;  %v465_v15 = vadd.f32 %v464_v5, %v463_v60 }
 0x86b   :  { %v416_v28 = vpop.xlane.xlu2 %415 }
 0x86c   :  { %v399_v18 = vrot.slane %v398_v17, 1  ;;  %v417_v29 = vrot.slane %v416_v28, 4 }
 0x86e   :  { %449 = vadd.xlane.f32.xlu1 %v448_v19  ;;  %v400_v21 = vadd.f32 %v399_v18, %v398_v17  ;;  %v418_v34 = vadd.f32 %v417_v29, %v416_v28  ;;  %v484_v18 = vsub.f32 1.0, %v483_v10 }
 0x870   :  { %1367 = vpush %v400_v21  ;;  %v419_v38 = vrot.slane %v418_v34, 2  ;;  %v485_v29 = vmul.f32 %v1506_v61, %v484_v18 }
 0x872   :  { %v420_v42 = vadd.f32 %v419_v38, %v418_v34 }
 0x873   :  { %v439_v44 = vpop.xlane.xlu2 %438 }
 0x874   :  { %v440_v48 = vrot.slane %v439_v44, 4  ;;  %v421_v49 = vrot.slane %v420_v42, 1 }
 0x876   :  { %426 = vadd.xlane.f32.xlu1 %v425_v23  ;;  %v441_v56 = vadd.f32 %v440_v48, %v439_v44  ;;  %v422_v57 = vadd.f32 %v421_v49, %v420_v42  ;;  %v1903_v49 = vpop.f32.mrf.mxu2 }
 0x878   :  { %v442_v63 = vrot.slane %v441_v56, 2 }
 0x87a   :  { %v443_v11 = vadd.f32 %v442_v63, %v441_v56 }
 0x87c   :  { %v444_v20 = vrot.slane %v443_v11, 1 }
 0x87e   :  { %471 = vadd.xlane.f32.xlu1 %v470_v26  ;;  %v466_v26 = vrot.slane %v465_v15, 1  ;;  %v909_v53 = vpop.f32.mrf.mxu2 }
 0x87f   :  { %v1909_v56 = vsub.f32 %v909_v53, %v1898_v46 }
 0x8a1   :  { %s1368_s6 = spop %1367 }
 0x8d1   :  { %v839_v30 = vpop.xlane.xlu1 %838 }
 0x8d2   :  { %v840_v32 = vcvt.f32.s32 %v839_v30  ;;  %v445_v30 = vadd.f32 %v444_v20, %v443_v11 }
 0x8d4   :  { %v843_v33 = vadd.s32 %v842_v31, %v840_v32 }
 0x8d6   :  { %vm844_vm8 = vcmp.eq.s32.totalorder %v1668_v3, %v843_v33  ;;  %v467_v33 = vadd.f32 %v466_v26, %v465_v15 }
 0x8d7   :  { %v1354_v36 = vsel %vm844_vm8, 1.0, %v1600_v13  ;;  %v1882_v37 = vsel %vm844_vm8, 1e+30, %v1828_v43 }
 0x8d8   :  { %1359 = vmatmul.msk.f32.gmra.mxu2 %vm184_vm11, %v1354_v36  ;;  %1364 = vmatmul.msk.f32.gmra.mxu3 %vm184_vm11, %v1354_v36  ;;  %v848_v0 = vsel %vm184_vm11, %v1882_v37, inf  ;;  %v486_v36 = vadd.f32 %v1506_v61, %v485_v29 }
 0x8d9   :  { %v405_v39 = vpop.xlane.xlu1 %404  ;;  %849 = vmin.xlane.f32.xlu2 %v848_v0 }
 0x8da   :  { %v406_v40 = vrot.slane %v405_v39, 4 }
 0x8dc   :  { %v407_v41 = vadd.f32 %v406_v40, %v405_v39  ;;  %v488_v39 = vsel %vm487_vm9, %v1506_v61, %v486_v36  ;;  %v968_v61 = vsel %vm391_vm6, %v1909_v56, 0.0 }
 0x8de   :  { %v408_v45 = vrot.slane %v407_v41, 2 }
 0x8e0   :  { %v409_v47 = vadd.f32 %v408_v45, %v407_v41 }
 0x8e1   :  { %v450_v43 = vpop.xlane.xlu1 %449 }
 0x8e2   :  { %v451_v50 = vrot.slane %v450_v43, 4  ;;  %v410_v52 = vrot.slane %v409_v47, 1 }
 0x8e4   :  { %v411_v55 = vadd.f32 %v410_v52, %v409_v47  ;;  %v452_v58 = vadd.f32 %v451_v50, %v450_v43 }
 0x8e6   :  { %1369 = vpush %v411_v55  ;;  %v453_v6 = vrot.slane %v452_v58, 2 }
 0x8e7   :  { %1371 = vpush %v422_v57 }
 0x8e8   :  { %v454_v14 = vadd.f32 %v453_v6, %v452_v58 }
 0x8e9   :  { %v427_v4 = vpop.xlane.xlu1 %426 }
 0x8ea   :  { %v428_v7 = vrot.slane %v427_v4, 4  ;;  %v455_v24 = vrot.slane %v454_v14, 1 }
 0x8ec   :  { %v429_v8 = vadd.f32 %v428_v7, %v427_v4  ;;  %v456_v32 = vadd.f32 %v455_v24, %v454_v14  ;;  %v937_v4 = vpop.f32.mrf.mxu3 }
 0x8ee   :  { %v430_v12 = vrot.slane %v429_v8, 2 }
 0x8f0   :  { %v431_v17 = vadd.f32 %v430_v12, %v429_v8 }
 0x8f1   :  { %v472_v19 = vpop.xlane.xlu1 %471 }
 0x8f2   :  { %v473_v21 = vrot.slane %v472_v19, 4  ;;  %v432_v23 = vrot.slane %v431_v17, 1 }
 0x8f4   :  { %v474_v27 = vadd.f32 %v473_v21, %v472_v19  ;;  %v433_v28 = vadd.f32 %v432_v23, %v431_v17  ;;  %v940_v20 = vpop.f32.mrf.mxu3 }
 0x8f5   :  { %v1934_v21 = vsub.f32 %v940_v20, %v1788_v25 }
 0x8f6   :  { %v475_v31 = vrot.slane %v474_v27, 2  ;;  %1373 = vpush %v433_v28 }
 0x8f7   :  { %1375 = vpush %v445_v30  ;;  %v1012_v23 = vsel %vm436_vm15, %v1934_v21, 0.0 }
 0x8f8   :  { %1377 = vpush %v456_v32  ;;  %v476_v34 = vadd.f32 %v475_v31, %v474_v27 }
 0x8f9   :  { %1379 = vpush %v467_v33 }
 0x8fa   :  { %v477_v0 = vrot.slane %v476_v34, 1 }
 0x8fc   :  { %v478_v38 = vadd.f32 %v477_v0, %v476_v34 }
 0x8fe   :  { %1381 = vpush %v478_v38 }
 0x8ff   :  { %1383 = vpush %v488_v39 }
 0x917   :  { %s1370_s28 = spop %1369 }
 0x918   :  { %s1372_s29 = spop %1371  ;;  %s413_s9 = sadd.f32 %s1370_s28, %s1368_s6 }
 0x91a   :  { %s424_s10 = sadd.f32 %s1372_s29, %s413_s9 }
 0x927   :  { %s1374_s30 = spop %1373 }
 0x928   :  { %s1376_s8 = spop %1375  ;;  %s435_s13 = sadd.f32 %s1374_s30, %s424_s10 }
 0x929   :  { %s1378_s0 = spop %1377 }
 0x92a   :  { %s458_s1 = sadd.f32 %s1378_s0, %s1376_s8  ;;  %s1380_s11 = spop %1379 }
 0x92c   :  { %s469_s12 = sadd.f32 %s1380_s11, %s458_s1 }
 0x92f   :  { %s1382_s14 = spop %1381 }
 0x930   :  { %s480_s15 = sadd.f32 %s1382_s14, %s469_s12  ;;  %s1888_s16 = spop %1383 }
 0x932   :  { %s481_s17 = sadd.f32 %s480_s15, %s435_s13 }
 0x934   :  { %s490_s18 = smul.f32 %s1888_s16, %s481_s17 }
 0x936   :  { %v1891_v40 = vstv %s490_s18 }
 0x937   :  { %v492_v41 = vsub.f32 %v1844_v59, %v1891_v40  ;;  %v531_v45 = vsub.f32 %v1870_v22, %v1891_v40  ;;  %v570_v43 = vsub.f32 %v1822_v35, %v1891_v40  ;;  %v505_v63 = vsub.f32 %v1859_v9, %v1891_v40 }
 0x938   :  { %v544_v8 = vsub.f32 %v1854_v2, %v1891_v40  ;;  %v583_v12 = vsub.f32 %v1875_v1, %v1891_v40  ;;  %v518_v0 = vsub.f32 %v1849_v62, %v1891_v40 }
 0x939   :  { %v493_v42 = vmul.f32 %v492_v41, %v492_v41  ;;  %v532_v47 = vmul.f32 %v531_v45, %v531_v45  ;;  %v571_v50 = vmul.f32 %v570_v43, %v570_v43  ;;  %v506_v6 = vmul.f32 %v505_v63, %v505_v63 }
 0x93a   :  { %v545_v10 = vmul.f32 %v544_v8, %v544_v8  ;;  %v584_v14 = vmul.f32 %v583_v12, %v583_v12  ;;  %v519_v38 = vmul.f32 %v518_v0, %v518_v0 }
 0x93b   :  { %v494_v44 = vsel %vm391_vm6, %v493_v42, 0.0  ;;  %v533_v48 = vsel %vm391_vm6, %v532_v47, 0.0  ;;  %v572_v52 = vsel %vm436_vm15, %v571_v50, 0.0  ;;  %v507_v5 = vsel %vm391_vm6, %v506_v6, 0.0 }
 0x93c   :  { %495 = vadd.xlane.f32.xlu1 %v494_v44  ;;  %v546_v11 = vsel %vm436_vm15, %v545_v10, 0.0  ;;  %v585_v15 = vsel %vm436_vm15, %v584_v14, 0.0  ;;  %v520_v42 = vsel %vm391_vm6, %v519_v38, 0.0  ;;  %v557_v44 = vsub.f32 %v1865_v16, %v1891_v40 }
 0x93d   :  { %v1603_v10 = vmov 223.0  }
 0x93e   :  { %1507 = vrcp.f32 %v1603_v10 }
 0x944   :  { %534 = vadd.xlane.f32.xlu1 %v533_v48  ;;  %v558_v48 = vmul.f32 %v557_v44, %v557_v44 }
 0x94c   :  { %573 = vadd.xlane.f32.xlu1 %v572_v52  ;;  %v850_v54 = vpop.xlane.xlu2 %849  ;;  %v559_v52 = vsel %vm436_vm15, %v558_v48, 0.0 }
 0x94d   :  { %vm851_vm10 = vcmp.le.f32.partialorder %v1882_v37, %v850_v54  ;;  %v1917_v37 = vsub.f32 %v937_v4, %v1788_v25  ;;  %v1946_v54 = vsub.f32 %v1903_v49, %v1898_v46 }
 0x94e   :  { %v852_v55 = vsel %vm851_vm10, %v1668_v3, 16  ;;  %vm681_vm10 = vcmask 146552  }
 0x94f   :  { %v853_v57 = vsel %vm184_vm11, %v852_v55, 2147483647  ;;  %v1001_v7 = vsel %vm436_vm15, %v1917_v37, 0.0  ;;  %v957_v55 = vsel %vm391_vm6, %v1946_v54, 0.0 }
 0x950   :  { %v855_v58 = vshra.s32 %v853_v57, 16  ;;  %v854_v32 = vand.u32 65535, %v853_v57 }
 0x952   :  { %v857_v60 = vcvt.s32.f32 %v855_v58  ;;  %v856_v34 = vcvt.s32.f32 %v854_v32 }
 0x954   :  { %969 = vadd.xlane.f32.xlu1 %v968_v61  ;;  %858 = vmin.xlane.f32.xlu2 %v857_v60 }
 0x95b   :  { %v912_v17 = vpop.f32.mrf.mxu2 }
 0x95c   :  { %1002 = vadd.xlane.f32.xlu1 %v1001_v7  ;;  %508 = vadd.xlane.f32.xlu2 %v507_v5  ;;  %v1929_v18 = vsub.f32 %v912_v17, %v1898_v46 }
 0x95e   :  { %v979_v19 = vsel %vm391_vm6, %v1929_v18, 0.0 }
 0x964   :  { %547 = vadd.xlane.f32.xlu2 %v546_v11 }
 0x96c   :  { %586 = vadd.xlane.f32.xlu2 %v585_v15 }
 0x974   :  { %980 = vadd.xlane.f32.xlu2 %v979_v19 }
 0x97c   :  { %1013 = vadd.xlane.f32.xlu2 %v1012_v23 }
 0x9af   :  { %v496_v24 = vpop.xlane.xlu1 %495 }
 0x9b0   :  { %v497_v26 = vrot.slane %v496_v24, 4 }
 0x9b2   :  { %v498_v27 = vadd.f32 %v497_v26, %v496_v24  ;;  %v1508_v24 = vpop.eup %1507 }
 0x9b4   :  { %v499_v28 = vrot.slane %v498_v27, 2 }
 0x9b6   :  { %v500_v29 = vadd.f32 %v499_v28, %v498_v27 }
 0x9b7   :  { %v535_v40 = vpop.xlane.xlu1 %534 }
 0x9b8   :  { %v501_v30 = vrot.slane %v500_v29, 1 }
 0x9ba   :  { %v502_v31 = vadd.f32 %v501_v30, %v500_v29 }
 0x9bc   :  { %1385 = vpush %v502_v31  ;;  %v598_v31 = vmul.f32 223.0, %v1508_v24 }
 0x9bf   :  { %v574_v11 = vpop.xlane.xlu1 %573 }
 0x9c0   :  { %v575_v15 = vrot.slane %v574_v11, 4 }
 0x9c2   :  { %v576_v27 = vadd.f32 %v575_v15, %v574_v11 }
 0x9c7   :  { %v859_v33 = vpop.xlane.xlu2 %858 }
 0x9c8   :  { %vm860_vm12 = vcmp.eq.f32.partialorder %v857_v60, %v859_v33  ;;  %v865_v58 = vcvt.f32.s32 %v859_v33  ;;  %v536_v60 = vrot.slane %v535_v40, 4 }
 0x9c9   :  { %v861_v36 = vsel %vm860_vm12, %v856_v34, inf  ;;  %vm686_vm12 = vcmask 179344  }
 0x9ca   :  { %862 = vmin.xlane.f32.xlu0 %v861_v36  ;;  %v866_v4 = vshll.u32 %v865_v58, 16  ;;  %v537_v5 = vadd.f32 %v536_v60, %v535_v40 }
 0x9cc   :  { %v538_v14 = vrot.slane %v537_v5, 2 }
 0x9ce   :  { %v539_v28 = vadd.f32 %v538_v14, %v537_v5 }
 0x9cf   :  { %v509_v39 = vpop.xlane.xlu2 %508 }
 0x9d0   :  { %v510_v41 = vrot.slane %v509_v39, 4  ;;  %v540_v34 = vrot.slane %v539_v28, 1 }
 0x9d2   :  { %v511_v45 = vadd.f32 %v510_v41, %v509_v39  ;;  %521 = vadd.xlane.f32.xlu0 %v520_v42  ;;  %v599_v41 = vsub.f32 1.0, %v598_v31  ;;  %v970_v31 = vpop.xlane.xlu1 %969 }
 0x9d4   :  { %v512_v47 = vrot.slane %v511_v45, 2 }
 0x9d6   :  { %v513_v43 = vadd.f32 %v512_v47, %v511_v45  ;;  %v541_v45 = vadd.f32 %v540_v34, %v539_v28 }
 0x9d7   :  { %v548_v57 = vpop.xlane.xlu2 %547 }
 0x9d8   :  { %v514_v50 = vrot.slane %v513_v43, 1  ;;  %v549_v61 = vrot.slane %v548_v57, 4 }
 0x9da   :  { %560 = vadd.xlane.f32.xlu0 %v559_v52  ;;  %v515_v53 = vadd.f32 %v514_v50, %v513_v43  ;;  %v550_v8 = vadd.f32 %v549_v61, %v548_v57  ;;  %v600_v52 = vmul.f32 %v1508_v24, %v599_v41 }
 0x9dc   :  { %1387 = vpush %v515_v53  ;;  %v551_v17 = vrot.slane %v550_v8, 2  ;;  %v601_v58 = vadd.f32 %v1508_v24, %v600_v52 }
 0x9de   :  { %v552_v29 = vadd.f32 %v551_v17, %v550_v8 }
 0x9df   :  { %v587_v49 = vpop.xlane.xlu2 %586 }
 0x9e0   :  { %v588_v20 = vrot.slane %v587_v49, 4  ;;  %v553_v36 = vrot.slane %v552_v29, 1 }
 0x9e2   :  { %958 = vadd.xlane.f32.xlu0 %v957_v55  ;;  %v589_v30 = vadd.f32 %v588_v20, %v587_v49  ;;  %v554_v43 = vadd.f32 %v553_v36, %v552_v29 }
 0x9e4   :  { %v590_v0 = vrot.slane %v589_v30, 2 }
 0x9e6   :  { %v591_v50 = vadd.f32 %v590_v0, %v589_v30 }
 0x9e8   :  { %v592_v57 = vrot.slane %v591_v50, 1 }
 0x9ed   :  { %s1386_s19 = spop %1385 }
 0xa0d   :  { %s1388_s20 = spop %1387 }
 0xa0e   :  { %s517_s23 = sadd.f32 %s1388_s20, %s1386_s19 }
 0xa3d   :  { %v863_v63 = vpop.xlane.xlu0 %862 }
 0xa3e   :  { %v864_v6 = vcvt.f32.s32 %v863_v63  ;;  %v593_v63 = vadd.f32 %v592_v57, %v591_v50 }
 0xa40   :  { %v867_v7 = vadd.s32 %v866_v4, %v864_v6 }
 0xa42   :  { %vm868_vm13 = vcmp.eq.s32.totalorder %v1668_v3, %v867_v7 }
 0xa43   :  { %v1355_v12 = vsel %vm868_vm13, 1.0, %v1600_v13  ;;  %v577_v13 = vrot.slane %v576_v27, 2  ;;  %vm694_vm13 = vcmask 212144  }
 0xa44   :  { %1360 = vmatmul.msk.f32.gmra.mxu2 %vm184_vm11, %v1355_v12  ;;  %1365 = vmatmul.msk.f32.gmra.mxu3 %vm184_vm11, %v1355_v12  ;;  %vm602_vm11 = vweird.f32 %v1508_v24 }
 0xa45   :  { %v522_v19 = vpop.xlane.xlu0 %521  ;;  %v578_v47 = vadd.f32 %v577_v13, %v576_v27  ;;  %v603_v4 = vsel %vm602_vm11, %v1508_v24, %v601_v58  ;;  %vm706_vm11 = vcmask 236752  }
 0xa46   :  { %v523_v23 = vrot.slane %v522_v19, 4 }
 0xa47   :  { %v579_v55 = vrot.slane %v578_v47, 1 }
 0xa48   :  { %v524_v26 = vadd.f32 %v523_v23, %v522_v19  ;;  %v943_v19 = vpop.f32.mrf.mxu3 }
 0xa49   :  { %v580_v61 = vadd.f32 %v579_v55, %v578_v47  ;;  %v1968_v29 = vsub.f32 %v943_v19, %v1788_v25 }
 0xa4a   :  { %v525_v3 = vrot.slane %v524_v26, 2 }
 0xa4b   :  { %v1023_v30 = vsel %vm436_vm15, %v1968_v29, 0.0 }
 0xa4c   :  { %v526_v32 = vadd.f32 %v525_v3, %v524_v26 }
 0xa4d   :  { %v561_v33 = vpop.xlane.xlu0 %560 }
 0xa4e   :  { %v562_v38 = vrot.slane %v561_v33, 4  ;;  %v527_v39 = vrot.slane %v526_v32, 1 }
 0xa50   :  { %v563_v42 = vadd.f32 %v562_v38, %v561_v33  ;;  %v528_v44 = vadd.f32 %v527_v39, %v526_v32  ;;  %v981_v32 = vpop.xlane.xlu2 %980  ;;  %v971_v33 = vrot.slane %v970_v31, 4 }
 0xa51   :  { %v982_v34 = vrot.slane %v981_v32, 4 }
 0xa52   :  { %v564_v48 = vrot.slane %v563_v42, 2  ;;  %1389 = vpush %v528_v44  ;;  %v972_v38 = vadd.f32 %v971_v33, %v970_v31 }
 0xa53   :  { %1391 = vpush %v541_v45  ;;  %v983_v39 = vadd.f32 %v982_v34, %v981_v32 }
 0xa54   :  { %1393 = vpush %v554_v43  ;;  %v565_v53 = vadd.f32 %v564_v48, %v563_v42 }
 0xa55   :  { %v959_v3 = vpop.xlane.xlu0 %958  ;;  %v984_v44 = vrot.slane %v983_v39, 2 }
 0xa56   :  { %v566_v40 = vrot.slane %v565_v53, 1  ;;  %v960_v13 = vrot.slane %v959_v3, 4 }
 0xa57   :  { %v985_v52 = vadd.f32 %v984_v44, %v983_v39 }
 0xa58   :  { %v567_v60 = vadd.f32 %v566_v40, %v565_v53  ;;  %v961_v0 = vadd.f32 %v960_v13, %v959_v3  ;;  %v1014_v19 = vpop.xlane.xlu2 %1013 }
 0xa5a   :  { %1395 = vpush %v567_v60  ;;  %v962_v41 = vrot.slane %v961_v0, 2 }
 0xa5b   :  { %1397 = vpush %v580_v61  ;;  %v986_v61 = vrot.slane %v985_v52, 1 }
 0xa5c   :  { %1399 = vpush %v593_v63  ;;  %v963_v47 = vadd.f32 %v962_v41, %v961_v0 }
 0xa5d   :  { %1401 = vpush %v603_v4 }
 0xa5e   :  { %v964_v40 = vrot.slane %v963_v47, 1 }
 0xa83   :  { %s1390_s21 = spop %1389 }
 0xa84   :  { %s1392_s22 = spop %1391  ;;  %s530_s25 = sadd.f32 %s1390_s21, %s517_s23 }
 0xa85   :  { %s1394_s24 = spop %1393 }
 0xa86   :  { %s543_s6 = sadd.f32 %s1392_s22, %s530_s25 }
 0xa8b   :  { %s1396_s26 = spop %1395 }
 0xa8c   :  { %s569_s27 = sadd.f32 %s1396_s26, %s1394_s24  ;;  %s1398_s2 = spop %1397 }
 0xa8d   :  { %s1400_s28 = spop %1399 }
 0xa8e   :  { %s582_s3 = sadd.f32 %s1398_s2, %s569_s27  ;;  %s1954_s30 = spop %1401 }
 0xa90   :  { %s595_s29 = sadd.f32 %s1400_s28, %s582_s3  ;;  %s1606_s28 = smov 7  }
 0xa92   :  { %s596_s8 = sadd.f32 %s595_s29, %s543_s6  ;;  %s1605_s6 = smov 11  }
 0xa93   :  { %s1607_s29 = smov 18  }
 0xa94   :  { %s605_s9 = smul.f32 %s1954_s30, %s596_s8  ;;  %s1608_s8 = smov 29  }
 0xa96   :  { %v606_v6 = vstv %s605_s9  ;;  %s1609_s9 = smov 22  }
 0xa97   :  { %1509 = vrsqrt.f32 %v606_v6  ;;  %vm614_vm14 = vcmp.eq.f32.partialorder %v606_v6, inf  ;;  %v617_v14 = vand.u32 2147483648, %v606_v6  ;;  %vm616_vm0 = vcmp.eq.f32.partialorder %v606_v6, 0.0 }
 0xa9d   :  { %v1510_v7 = vpop.eup %1509 }
 0xa9e   :  { %v608_v5 = vmul.f32 %v1510_v7, %v606_v6 }
 0xaa0   :  { %v609_v8 = vmul.f32 %v1510_v7, %v608_v5  ;;  %v987_v5 = vadd.f32 %v986_v61, %v985_v52 }
 0xaa2   :  { %v610_v10 = vmul.f32 0.5, %v609_v8  ;;  %v1975_v8 = vld [vmem:[%s2110_s4] sm:$0x1] }
 0xaa4   :  { %v611_v11 = vsub.f32 1.5, %v610_v10 }
 0xaa6   :  { %v612_v49 = vmul.f32 %v1510_v7, %v611_v11 }
 0xaa8   :  { %v613_v12 = vmul.f32 %v612_v49, %v606_v6 }
 0xaaa   :  { %v615_v15 = vsel %vm614_vm14, %v606_v6, %v613_v12  ;;  %v965_v6 = vadd.f32 %v964_v40, %v963_v47  ;;  %v1983_v12 = vld [vmem:[%s2111_s5] ss:$0 sm:$0xff]  ;;  %vm711_vm14 = vcmask 269544  }
 0xaab   :  { %v618_v17 = vsel %vm616_vm0, %v617_v14, %v615_v15  ;;  %vm719_vm0 = vcmask 302344  }
 0xaac   :  { %1403 = vpush %v618_v17  ;;  %v1003_v17 = vpop.xlane.xlu1 %1002 }
 0xac7   :  { %v915_v20 = vpop.f32.mrf.mxu2  ;;  %v946_v23 = vpop.f32.mrf.mxu3 }
 0xac8   :  { %v1958_v24 = vsub.f32 %v915_v20, %v1898_v46  ;;  %v1961_v26 = vsub.f32 %v946_v23, %v1788_v25  ;;  %v973_v25 = vrot.slane %v972_v38, 2  ;;  %v1004_v20 = vrot.slane %v1003_v17, 4 }
 0xac9   :  { %v1015_v23 = vrot.slane %v1014_v19, 4 }
 0xaca   :  { %v1034_v27 = vsel %vm436_vm15, %v1961_v26, 0.0  ;;  %v990_v28 = vsel %vm391_vm6, %v1958_v24, 0.0  ;;  %v974_v43 = vadd.f32 %v973_v25, %v972_v38 }
 0xacb   :  { %1035 = vadd.xlane.f32.xlu1 %v1034_v27  ;;  %991 = vadd.xlane.f32.xlu0 %v990_v28  ;;  %v1005_v27 = vadd.f32 %v1004_v20, %v1003_v17  ;;  %v1016_v28 = vadd.f32 %v1015_v23, %v1014_v19 }
 0xacc   :  { %v975_v58 = vrot.slane %v974_v43, 1 }
 0xacd   :  { %v1017_v32 = vrot.slane %v1016_v28, 2 }
 0xace   :  { %v976_v7 = vadd.f32 %v975_v58, %v974_v43 }
 0xacf   :  { %v1018_v38 = vadd.f32 %v1017_v32, %v1016_v28 }
 0xad1   :  { %v1019_v47 = vrot.slane %v1018_v38, 1 }
 0xad3   :  { %1024 = vadd.xlane.f32.xlu0 %v1023_v30  ;;  %v1006_v30 = vrot.slane %v1005_v27, 2 }
 0xad5   :  { %v1007_v0 = vadd.f32 %v1006_v30, %v1005_v27 }
 0xadd   :  { %s1404_s0 = spop %1403 }
 0xade   :  { %s620_s1 = sadd.f32 1e-05, %s1404_s0  ;;  %s1610_s0 = smov 33  }
 0xae0   :  { %v621_v36 = vstv %s620_s1 }
 0xae1   :  { %1511 = vrcp.f32 %v621_v36  ;;  %v633_v50 = vand.u32 2147483648, %v621_v36  ;;  %v631_v55 = vand.u32 2147483647, %v621_v36  ;;  %vm627_vm2 = vweird.f32 %v621_v36 }
 0xae3   :  { %v634_v60 = vor.u32 1.1754944e-38, %v633_v50  ;;  %vm632_vm4 = vcmp.eq.f32.partialorder %v631_v55, 8.507059e+37  ;;  %v1020_v55 = vadd.f32 %v1019_v47, %v1018_v38 }
 0xae7   :  { %v1512_v42 = vpop.eup %1511 }
 0xae8   :  { %v623_v45 = vmul.f32 %v1512_v42, %v621_v36  ;;  %vm628_vm1 = vweird.f32 %v1512_v42 }
 0xae9   :  { %vm629_vm3 = vmor %vm627_vm2, %vm628_vm1  ;;  %vm731_vm1 = vcmask 326952  }
 0xaea   :  { %v624_v48 = vsub.f32 1.0, %v623_v45 }
 0xaec   :  { %v625_v53 = vmul.f32 %v1512_v42, %v624_v48 }
 0xaee   :  { %v626_v57 = vadd.f32 %v1512_v42, %v625_v53 }
 0xaf0   :  { %v630_v63 = vsel %vm629_vm3, %v1512_v42, %v626_v57  ;;  %v1008_v42 = vrot.slane %v1007_v0, 1 }
 0xaf1   :  { %v635_v4 = vsel %vm632_vm4, %v634_v60, %v630_v63 }
 0xaf2   :  { %1405 = vpush %v635_v4  ;;  %v1009_v50 = vadd.f32 %v1008_v42, %v1007_v0 }
 0xaf3   :  { %1407 = vpush %v965_v6 }
 0xaf4   :  { %1409 = vpush %v976_v7 }
 0xaf5   :  { %1411 = vpush %v987_v5 }
 0xb23   :  { %s1406_s12 = spop %1405 }
 0xb24   :  { %v637_v10 = vstv %s1406_s12  ;;  %s1408_s4 = spop %1407 }
 0xb25   :  { %v638_v11 = vmul.f32 %v637_v10, %v1975_v8  ;;  %s1410_s5 = spop %1409 }
 0xb26   :  { %s1412_s15 = spop %1411  ;;  %s978_s19 = sadd.f32 %s1410_s5, %s1408_s4 }
 0xb27   :  { %v1978_v49 = vperm.slane %v638_v11, 0 }
 0xb28   :  { %s989_s22 = sadd.f32 %s1412_s15, %s978_s19 }
 0xb29   :  { %v646_v14 = vmul.f32 %v1978_v49, %v1844_v59  ;;  %v663_v38 = vmul.f32 %v1978_v49, %v1859_v9 }
 0xb2b   :  { %v647_v15 = vadd.f32 %v1983_v12, %v646_v14 }
 0xb2d   :  { %648 = vst.msk [vmem:[#allocation4] sm:$0xff] %vm391_vm6, %v647_v15 }
 0xb3e   :  { %v1036_v3 = vpop.xlane.xlu1 %1035  ;;  %v992_v31 = vpop.xlane.xlu0 %991 }
 0xb3f   :  { %v1037_v13 = vrot.slane %v1036_v3, 4  ;;  %v993_v33 = vrot.slane %v992_v31, 4 }
 0xb41   :  { %v994_v34 = vadd.f32 %v993_v33, %v992_v31  ;;  %v1038_v36 = vadd.f32 %v1037_v13, %v1036_v3 }
 0xb43   :  { %v995_v59 = vrot.slane %v994_v34, 2  ;;  %v1039_v41 = vrot.slane %v1038_v36, 2 }
 0xb45   :  { %v996_v39 = vadd.f32 %v995_v59, %v994_v34  ;;  %v1040_v52 = vadd.f32 %v1039_v41, %v1038_v36 }
 0xb46   :  { %v1025_v25 = vpop.xlane.xlu0 %1024 }
 0xb47   :  { %v1026_v44 = vrot.slane %v1025_v25, 4  ;;  %v997_v45 = vrot.slane %v996_v39, 1  ;;  %v1041_v57 = vrot.slane %v1040_v52, 1 }
 0xb49   :  { %v1027_v48 = vadd.f32 %v1026_v44, %v1025_v25  ;;  %v998_v43 = vadd.f32 %v997_v45, %v996_v39  ;;  %v1042_v61 = vadd.f32 %v1041_v57, %v1040_v52  ;;  %v664_v39 = vadd.f32 %v1983_v12, %v663_v38 }
 0xb4b   :  { %v1028_v53 = vrot.slane %v1027_v48, 2  ;;  %1413 = vpush %v998_v43 }
 0xb4c   :  { %1415 = vpush %v1009_v50 }
 0xb4d   :  { %1417 = vpush %v1020_v55  ;;  %v1029_v40 = vadd.f32 %v1028_v53, %v1027_v48 }
 0xb4f   :  { %v1030_v58 = vrot.slane %v1029_v40, 1 }
 0xb51   :  { %v1031_v60 = vadd.f32 %v1030_v58, %v1029_v40 }
 0xb53   :  { %1419 = vpush %v1031_v60 }
 0xb54   :  { %1421 = vpush %v1042_v61 }
 0xb7c   :  { %s1414_s17 = spop %1413 }
 0xb7d   :  { %s1416_s18 = spop %1415  ;;  %s1000_s25 = sadd.f32 %s1414_s17, %s989_s22 }
 0xb7e   :  { %s1418_s20 = spop %1417 }
 0xb7f   :  { %s1022_s21 = sadd.f32 %s1418_s20, %s1416_s18 }
 0xb84   :  { %s1420_s23 = spop %1419 }
 0xb85   :  { %s1033_s24 = sadd.f32 %s1420_s23, %s1022_s21  ;;  %s1422_s26 = spop %1421 }
 0xb87   :  { %s1044_s27 = sadd.f32 %s1422_s26, %s1033_s24  ;;  %s1611_s26 = smov 40  }
 0xb89   :  { %s1045_s2 = sadd.f32 %s1044_s27, %s1000_s25  ;;  %s1612_s27 = smov [#allocation4]  }
 0xb8b   :  { %s1054_s3 = smul.f32 %s1888_s16, %s1045_s2  ;;  %s1604_s16 = smov 4  }
 0xb8c   :  { %s1296_s2 = sshll.u32 %s1612_s27, 4  ;;  %s1297_s2 = int_to_ptr.vmem [resolvable:$true] %s1296_s2 }
 0xb8d   :  { %v1055_v63 = vstv %s1054_s3 }
 0xb8e   :  { %v1082_v4 = vsub.f32 %v1929_v18, %v1055_v63  ;;  %v1069_v6 = vsub.f32 %v1909_v56, %v1055_v63  ;;  %v1056_v7 = vsub.f32 %v1946_v54, %v1055_v63  ;;  %v1121_v14 = vsub.f32 %v1934_v21, %v1055_v63 }
 0xb8f   :  { %v1108_v20 = vsub.f32 %v1917_v37, %v1055_v63  ;;  %v1095_v23 = vsub.f32 %v1958_v24, %v1055_v63  ;;  %v1147_v32 = vsub.f32 %v1961_v26, %v1055_v63  ;;  %v1134_v33 = vsub.f32 %v1968_v29, %v1055_v63 }
 0xb90   :  { %v1083_v5 = vmul.f32 %v1082_v4, %v1082_v4  ;;  %v1070_v10 = vmul.f32 %v1069_v6, %v1069_v6  ;;  %v1057_v11 = vmul.f32 %v1056_v7, %v1056_v7  ;;  %v1122_v27 = vmul.f32 %v1121_v14, %v1121_v14 }
 0xb91   :  { %v1109_v28 = vmul.f32 %v1108_v20, %v1108_v20  ;;  %v1096_v30 = vmul.f32 %v1095_v23, %v1095_v23  ;;  %v1148_v34 = vmul.f32 %v1147_v32, %v1147_v32  ;;  %v1135_v36 = vmul.f32 %v1134_v33, %v1134_v33 }
 0xb92   :  { %v1084_v15 = vsel %vm391_vm6, %v1083_v5, 0.0  ;;  %v1071_v17 = vsel %vm391_vm6, %v1070_v10, 0.0  ;;  %v1058_v19 = vsel %vm391_vm6, %v1057_v11, 0.0  ;;  %v1123_v3 = vsel %vm436_vm15, %v1122_v27, 0.0 }
 0xb93   :  { %1085 = vadd.xlane.f32.xlu1 %v1084_v15  ;;  %1072 = vadd.xlane.f32.xlu0 %v1071_v17  ;;  %v1110_v31 = vsel %vm436_vm15, %v1109_v28, 0.0  ;;  %v1097_v13 = vsel %vm391_vm6, %v1096_v30, 0.0  ;;  %v1149_v0 = vsel %vm436_vm15, %v1148_v34, 0.0  ;;  %v1136_v59 = vsel %vm436_vm15, %v1135_v36, 0.0 }
 0xb94   :  { %1059 = vadd.xlane.f32.xlu2 %v1058_v19  ;;  %vm655_vm15 = vcmask 56352  }
 0xb9b   :  { %1124 = vadd.xlane.f32.xlu1 %v1123_v3  ;;  %1111 = vadd.xlane.f32.xlu0 %v1110_v31 }
 0xb9c   :  { %1098 = vadd.xlane.f32.xlu2 %v1097_v13 }
 0xba3   :  { %1150 = vadd.xlane.f32.xlu0 %v1149_v0 }
 0xba4   :  { %1137 = vadd.xlane.f32.xlu2 %v1136_v59 }
 0xbb4   :  { %672 = vrot.lane.b32.xlu1 %v1865_v16, %s1604_s16 }
 0xbb7   :  { %697 = vrot.lane.b32.xlu0 %v1822_v35, %s1604_s16 }
 0xbbc   :  { %1232 = vrot.lane.b32.xlu2 %v1934_v21, %s1604_s16  ;;  %1254 = vrot.lane.b32.xlu1 %v1968_v29, %s1604_s16 }
 0xbbf   :  { %1276 = vrot.lane.b32.xlu0 %v1961_v26, %s1604_s16 }
 0xbc4   :  { %722 = vrot.lane.b32.xlu2 %v1875_v1, %s1604_s16  ;;  %650 = vrot.lane.b32.xlu1 %v1854_v2, %s1604_s16 }
 0xbc7   :  { %666 = vrot.lane.b32.xlu0 %v664_v39, %s1605_s6 }
 0xbcc   :  { %658 = vrot.lane.b32.xlu2 %v1838_v51, %s1606_s28  ;;  %1213 = vrot.lane.b32.xlu1 %v1917_v37, %s1604_s16 }
 0xbcf   :  { %1220 = vrot.lane.b32.xlu0 %v1898_v46, %s1606_s28  ;;  %s1613_s28 = smov 128  }
 0xbd4   :  { %1242 = vrot.lane.b32.xlu1 %v1898_v46, %s1607_s29 }
 0xbd7   :  { %683 = vrot.lane.b32.xlu0 %v1838_v51, %s1607_s29  ;;  %s1614_s29 = smov 8  }
 0xbdf   :  { %708 = vrot.lane.b32.xlu0 %v1838_v51, %s1608_s8 }
 0xc06   :  { %v1086_v35 = vpop.xlane.xlu1 %1085  ;;  %v1073_v2 = vpop.xlane.xlu0 %1072 }
 0xc07   :  { %v1087_v9 = vrot.slane %v1086_v35, 4  ;;  %v1074_v16 = vrot.slane %v1073_v2, 4  ;;  %v1060_v1 = vpop.xlane.xlu2 %1059 }
 0xc08   :  { %v1061_v21 = vrot.slane %v1060_v1, 4 }
 0xc09   :  { %v1088_v26 = vadd.f32 %v1087_v9, %v1086_v35  ;;  %v1075_v29 = vadd.f32 %v1074_v16, %v1073_v2 }
 0xc0a   :  { %v1062_v37 = vadd.f32 %v1061_v21, %v1060_v1 }
 0xc0b   :  { %v1089_v41 = vrot.slane %v1088_v26, 2  ;;  %v1076_v25 = vrot.slane %v1075_v29, 2 }
 0xc0c   :  { %v1063_v42 = vrot.slane %v1062_v37, 2 }
 0xc0d   :  { %v1077_v44 = vadd.f32 %v1076_v25, %v1075_v29  ;;  %v1090_v45 = vadd.f32 %v1089_v41, %v1088_v26  ;;  %v688_v25 = vmul.f32 %v1978_v49, %v1849_v62 }
 0xc0e   :  { %v1125_v47 = vpop.xlane.xlu1 %1124  ;;  %v1112_v48 = vpop.xlane.xlu0 %1111  ;;  %v1064_v43 = vadd.f32 %v1063_v42, %v1062_v37 }
 0xc0f   :  { %v1126_v50 = vrot.slane %v1125_v47, 4  ;;  %v1113_v52 = vrot.slane %v1112_v48, 4  ;;  %v1099_v53 = vpop.xlane.xlu2 %1098  ;;  %v1078_v55 = vrot.slane %v1077_v44, 1  ;;  %v1091_v40 = vrot.slane %v1090_v45, 1 }
 0xc10   :  { %v1100_v57 = vrot.slane %v1099_v53, 4  ;;  %v1065_v58 = vrot.slane %v1064_v43, 1 }
 0xc11   :  { %v1127_v60 = vadd.f32 %v1126_v50, %v1125_v47  ;;  %v1114_v61 = vadd.f32 %v1113_v52, %v1112_v48  ;;  %v1079_v63 = vadd.f32 %v1078_v55, %v1077_v44  ;;  %v1092_v7 = vadd.f32 %v1091_v40, %v1090_v45 }
 0xc12   :  { %v1101_v4 = vadd.f32 %v1100_v57, %v1099_v53  ;;  %v1066_v6 = vadd.f32 %v1065_v58, %v1064_v43  ;;  %v689_v45 = vadd.f32 %v1983_v12, %v688_v25  ;;  %v713_v48 = vmul.f32 %v1978_v49, %v1870_v22 }
 0xc13   :  { %v1128_v5 = vrot.slane %v1127_v60, 2  ;;  %v1115_v10 = vrot.slane %v1114_v61, 2 }
 0xc14   :  { %v1102_v11 = vrot.slane %v1101_v4, 2  ;;  %1423 = vpush %v1066_v6  ;;  %v714_v53 = vadd.f32 %v1983_v12, %v713_v48 }
 0xc15   :  { %1425 = vpush %v1079_v63  ;;  %v1116_v14 = vadd.f32 %v1115_v10, %v1114_v61  ;;  %v1129_v15 = vadd.f32 %v1128_v5, %v1127_v60 }
 0xc16   :  { %1427 = vpush %v1092_v7  ;;  %v1151_v17 = vpop.xlane.xlu0 %1150  ;;  %v1103_v19 = vadd.f32 %v1102_v11, %v1101_v4 }
 0xc17   :  { %v1152_v20 = vrot.slane %v1151_v17, 4  ;;  %v1138_v23 = vpop.xlane.xlu2 %1137  ;;  %v1117_v27 = vrot.slane %v1116_v14, 1  ;;  %v1130_v28 = vrot.slane %v1129_v15, 1 }
 0xc18   :  { %v1139_v30 = vrot.slane %v1138_v23, 4  ;;  %v1104_v3 = vrot.slane %v1103_v19, 1 }
 0xc19   :  { %v1153_v31 = vadd.f32 %v1152_v20, %v1151_v17  ;;  %v1118_v32 = vadd.f32 %v1117_v27, %v1116_v14  ;;  %v1131_v34 = vadd.f32 %v1130_v28, %v1129_v15 }
 0xc1a   :  { %v1140_v13 = vadd.f32 %v1139_v30, %v1138_v23  ;;  %v1105_v33 = vadd.f32 %v1104_v3, %v1103_v19 }
 0xc1b   :  { %v1154_v36 = vrot.slane %v1153_v31, 2 }
 0xc1c   :  { %v1141_v0 = vrot.slane %v1140_v13, 2  ;;  %1429 = vpush %v1105_v33 }
 0xc1d   :  { %1431 = vpush %v1118_v32  ;;  %v1155_v59 = vadd.f32 %v1154_v36, %v1153_v31 }
 0xc1e   :  { %1433 = vpush %v1131_v34  ;;  %v1142_v38 = vadd.f32 %v1141_v0, %v1140_v13 }
 0xc1f   :  { %v1156_v39 = vrot.slane %v1155_v59, 1  ;;  %v2024_v1 = vpop.permute.xlu2 %1232 }
 0xc20   :  { %v1143_v35 = vrot.slane %v1142_v38, 1 }
 0xc21   :  { %v1157_v2 = vadd.f32 %v1156_v39, %v1155_v59 }
 0xc22   :  { %v1144_v9 = vadd.f32 %v1143_v35, %v1142_v38 }
 0xc24   :  { %1435 = vpush %v1144_v9 }
 0xc25   :  { %1437 = vpush %v1157_v2 }
 0xc26   :  { %v673_v16 = vpop.permute.xlu1 %672 }
 0xc27   :  { %v675_v21 = vmul.f32 %v673_v16, %v1978_v49  ;;  %v723_v44 = vpop.permute.xlu2 %722 }
 0xc28   :  { %v725_v50 = vmul.f32 %v723_v44, %v1978_v49 }
 0xc29   :  { %v676_v26 = vadd.f32 %v1983_v12, %v675_v21  ;;  %v698_v29 = vpop.permute.xlu0 %697 }
 0xc2a   :  { %v700_v37 = vmul.f32 %v698_v29, %v1978_v49  ;;  %v726_v22 = vadd.f32 %v1983_v12, %v725_v50 }
 0xc2b   :  { %678 = vrot.lane.b32.xlu2 %v676_v26, %s1605_s6 }
 0xc2c   :  { %v701_v41 = vadd.f32 %v1983_v12, %v700_v37 }
 0xc2e   :  { %v2033_v42 = vpop.permute.xlu1 %1254  ;;  %703 = vrot.lane.b32.xlu1 %v701_v41, %s1609_s9 }
 0xc2f   :  { %v659_v55 = vpop.permute.xlu2 %658 }
 0xc31   :  { %v2037_v47 = vpop.permute.xlu0 %1276 }
 0xc33   :  { %691 = vrot.lane.b32.xlu2 %v689_v45, %s1609_s9 }
 0xc36   :  { %v651_v43 = vpop.permute.xlu1 %650  ;;  %1264 = vrot.lane.b32.xlu1 %v1898_v46, %s1608_s8 }
 0xc37   :  { %v653_v62 = vmul.f32 %v651_v43, %v1978_v49 }
 0xc39   :  { %v654_v52 = vadd.f32 %v1983_v12, %v653_v62  ;;  %v667_v40 = vpop.permute.xlu0 %666 }
 0xc3b   :  { %656 = vst.msk [vmem:[#allocation4] sm:$0xff] %vm655_vm15, %v654_v52  ;;  %716 = vrot.lane.b32.xlu2 %v714_v53, %s1610_s0 }
 0xc3c   :  { %662 = vst.msk [vmem:[#allocation4] sm:$0xff] %vm661_vm5, %v659_v55 }
 0xc3d   :  { %670 = vst.msk [vmem:[#allocation4] sm:$0xff] %vm669_vm7, %v667_v40 }
 0xc3e   :  { %728 = vrot.lane.b32.xlu1 %v726_v22, %s1610_s0  ;;  %v1214_v19 = vpop.permute.xlu1 %1213 }
 0xc41   :  { %v2055_v11 = vpop.permute.xlu0 %1220 }
 0xc45   :  { %s1424_s1 = spop %1423 }
 0xc46   :  { %s1426_s10 = spop %1425  ;;  %v2060_v20 = vpop.permute.xlu1 %1242 }
 0xc47   :  { %s1428_s11 = spop %1427  ;;  %s1081_s14 = sadd.f32 %s1426_s10, %s1424_s1 }
 0xc49   :  { %s1094_s15 = sadd.f32 %s1428_s11, %s1081_s14  ;;  %v684_v15 = vpop.permute.xlu0 %683 }
 0xc4d   :  { %s1430_s12 = spop %1429 }
 0xc4e   :  { %s1432_s13 = spop %1431  ;;  %s1107_s19 = sadd.f32 %s1430_s12, %s1094_s15 }
 0xc4f   :  { %s1434_s4 = spop %1433 }
 0xc50   :  { %s1133_s5 = sadd.f32 %s1434_s4, %s1432_s13 }
 0xc51   :  { %v709_v27 = vpop.permute.xlu0 %708 }
 0xc55   :  { %s1436_s17 = spop %1435 }
 0xc56   :  { %s1146_s18 = sadd.f32 %s1436_s17, %s1133_s5  ;;  %s1438_s20 = spop %1437 }
 0xc58   :  { %s1159_s21 = sadd.f32 %s1438_s20, %s1146_s18 }
 0xc5a   :  { %s1160_s22 = sadd.f32 %s1159_s21, %s1107_s19 }
 0xc5c   :  { %s1169_s23 = smul.f32 %s1954_s30, %s1160_s22 }
 0xc5e   :  { %v1170_v49 = vstv %s1169_s23 }
 0xc5f   :  { %1513 = vrsqrt.f32 %v1170_v49  ;;  %vm1178_vm8 = vcmp.eq.f32.partialorder %v1170_v49, inf  ;;  %v1181_v7 = vand.u32 2147483648, %v1170_v49  ;;  %vm1180_vm9 = vcmp.eq.f32.partialorder %v1170_v49, 0.0 }
 0xc65   :  { %v1514_v57 = vpop.eup %1513 }
 0xc66   :  { %v1172_v58 = vmul.f32 %v1514_v57, %v1170_v49 }
 0xc68   :  { %v1173_v60 = vmul.f32 %v1514_v57, %v1172_v58 }
 0xc6a   :  { %v1174_v61 = vmul.f32 0.5, %v1173_v60 }
 0xc6c   :  { %v1175_v63 = vsub.f32 1.5, %v1174_v61 }
 0xc6e   :  { %v1176_v4 = vmul.f32 %v1514_v57, %v1175_v63 }
 0xc70   :  { %v1177_v6 = vmul.f32 %v1176_v4, %v1170_v49 }
 0xc72   :  { %v1179_v5 = vsel %vm1178_vm8, %v1170_v49, %v1177_v6 }
 0xc73   :  { %v1182_v10 = vsel %vm1180_vm9, %v1181_v7, %v1179_v5 }
 0xc74   :  { %1439 = vpush %v1182_v10 }
 0xc85   :  { %v679_v14 = vpop.permute.xlu2 %678 }
 0xc86   :  { %682 = vst.msk [vmem:[#allocation4] sm:$0xff] %vm681_vm10, %v679_v14 }
 0xc87   :  { %687 = vst.msk [vmem:[#allocation4] sm:$0xff] %vm686_vm12, %v684_v15 }
 0xc8d   :  { %v692_v17 = vpop.permute.xlu2 %691 }
 0xc8e   :  { %695 = vst.msk [vmem:[#allocation4] sm:$0xff] %vm694_vm13, %v692_v17 }
 0xc95   :  { %v717_v28 = vpop.permute.xlu2 %716 }
 0xca0   :  { %v704_v23 = vpop.permute.xlu1 %703 }
 0xca1   :  { %707 = vst.msk [vmem:[#allocation4] sm:$0xff] %vm706_vm11, %v704_v23 }
 0xca2   :  { %712 = vst.msk [vmem:[#allocation4] sm:$0xff] %vm711_vm14, %v709_v27 }
 0xca3   :  { %720 = vst.msk [vmem:[#allocation4] sm:$0xff] %vm719_vm0, %v717_v28 }
 0xca5   :  { %s1440_s30 = spop %1439 }
 0xca6   :  { %s1184_s24 = sadd.f32 1e-05, %s1440_s30 }
 0xca8   :  { %v1185_v30 = vstv %s1184_s24  ;;  %v1265_v3 = vpop.permute.xlu1 %1264 }
 0xca9   :  { %1515 = vrcp.f32 %v1185_v30  ;;  %v1197_v34 = vand.u32 2147483648, %v1185_v30  ;;  %v1195_v0 = vand.u32 2147483647, %v1185_v30  ;;  %vm1191_vm3 = vweird.f32 %v1185_v30 }
 0xcab   :  { %v1198_v38 = vor.u32 1.1754944e-38, %v1197_v34  ;;  %vm1196_vm8 = vcmp.eq.f32.partialorder %v1195_v0, 8.507059e+37 }
 0xcaf   :  { %v1516_v31 = vpop.eup %1515 }
 0xcb0   :  { %v1187_v32 = vmul.f32 %v1516_v31, %v1185_v30  ;;  %v729_v13 = vpop.permute.xlu1 %728  ;;  %vm1192_vm2 = vweird.f32 %v1516_v31 }
 0xcb1   :  { %732 = vst.msk [vmem:[#allocation4] sm:$0xff] %vm731_vm1, %v729_v13  ;;  %vm1193_vm4 = vmor %vm1191_vm3, %vm1192_vm2 }
 0xcb2   :  { %v1188_v33 = vsub.f32 1.0, %v1187_v32 }
 0xcb4   :  { %v1189_v36 = vmul.f32 %v1516_v31, %v1188_v33 }
 0xcb6   :  { %v1190_v59 = vadd.f32 %v1516_v31, %v1189_v36 }
 0xcb8   :  { %v1194_v39 = vsel %vm1193_vm4, %v1516_v31, %v1190_v59 }
 0xcb9   :  { %v1199_v35 = vsel %vm1196_vm8, %v1198_v38, %v1194_v39 }
 0xcba   :  { %1441 = vpush %v1199_v35 }
 0xceb   :  { %s1442_s25 = spop %1441 }
 0xcec   :  { %v1201_v2 = vstv %s1442_s25 }
 0xced   :  { %v1202_v9 = vmul.f32 %v1201_v2, %v1975_v8 }
 0xcef   :  { %v1204_v16 = vperm.slane %v1202_v9, 0 }
 0xcf1   :  { %v1246_v21 = vmul.f32 %v1204_v16, %v1929_v18  ;;  %v1235_v26 = vmul.f32 %v2024_v1, %v1204_v16  ;;  %v1224_v29 = vmul.f32 %v1204_v16, %v1909_v56  ;;  %v1208_v37 = vmul.f32 %v1204_v16, %v1946_v54 }
 0xcf2   :  { %v1216_v41 = vmul.f32 %v1214_v19, %v1204_v16  ;;  %v1268_v56 = vmul.f32 %v1204_v16, %v1958_v24  ;;  %v1257_v18 = vmul.f32 %v2033_v42, %v1204_v16  ;;  %v1279_v24 = vmul.f32 %v2037_v47, %v1204_v16 }
 0xcf3   :  { %v1247_v25 = vadd.f32 %v1983_v12, %v1246_v21  ;;  %v1236_v44 = vadd.f32 %v1983_v12, %v1235_v26  ;;  %v1225_v45 = vadd.f32 %v1983_v12, %v1224_v29  ;;  %v1209_v48 = vadd.f32 %v1983_v12, %v1208_v37 }
 0xcf4   :  { %v1217_v8 = vadd.f32 %v1983_v12, %v1216_v41  ;;  %v1269_v54 = vadd.f32 %v1983_v12, %v1268_v56  ;;  %v1258_v1 = vadd.f32 %v1983_v12, %v1257_v18  ;;  %v1280_v42 = vadd.f32 %v1983_v12, %v1279_v24 }
 0xcf5   :  { %1249 = vrot.lane.b32.xlu0 %v1247_v25, %s1609_s9  ;;  %1238 = vrot.lane.b32.xlu2 %v1236_v44, %s1605_s6  ;;  %1211 = vst.msk [vmem:[#allocation4 + $0x8] sm:$0xff] %vm391_vm6, %v1209_v48  ;;  %vm736_vm6 = vcmask 359744  }
 0xcf6   :  { %1227 = vrot.lane.b32.xlu1 %v1225_v45, %s1605_s6  ;;  %1218 = vst.msk [vmem:[#allocation4 + $0x8] sm:$0xff] %vm655_vm15, %v1217_v8  ;;  %s1298_s6 = sshll.u32 %s2113_s7, 4  ;;  %s1299_s6 = int_to_ptr.hbm [resolvable:$true] %s1298_s6 }
 0xcf7   :  { %1223 = vst.msk [vmem:[#allocation4 + $0x8] sm:$0xff] %vm661_vm5, %v2055_v11 }
 0xcfd   :  { %1271 = vrot.lane.b32.xlu0 %v1269_v54, %s1610_s0  ;;  %1260 = vrot.lane.b32.xlu2 %v1258_v1, %s1609_s9 }
 0xcfe   :  { %1286 = vrot.lane.b32.xlu1 %v1898_v46, %s1611_s26 }
 0xd05   :  { %733 = vrot.lane.b32.xlu0 %v1838_v51, %s1611_s26  ;;  %1282 = vrot.lane.b32.xlu2 %v1280_v42, %s1610_s0 }
 0xd4f   :  { %v1239_v43 = vpop.permute.xlu2 %1238 }
 0xd57   :  { %v1261_v62 = vpop.permute.xlu2 %1260 }
 0xd5f   :  { %v1283_v46 = vpop.permute.xlu2 %1282 }
 0xd67   :  { %v1250_v50 = vpop.permute.xlu0 %1249 }
 0xd68   :  { %v1228_v52 = vpop.permute.xlu1 %1227 }
 0xd69   :  { %1230 = vst.msk [vmem:[#allocation4 + $0x8] sm:$0xff] %vm669_vm7, %v1228_v52 }
 0xd6a   :  { %1241 = vst.msk [vmem:[#allocation4 + $0x8] sm:$0xff] %vm681_vm10, %v1239_v43 }
 0xd6b   :  { %1245 = vst.msk [vmem:[#allocation4 + $0x8] sm:$0xff] %vm686_vm12, %v2060_v20 }
 0xd6c   :  { %1252 = vst.msk [vmem:[#allocation4 + $0x8] sm:$0xff] %vm694_vm13, %v1250_v50 }
 0xd6d   :  { %1263 = vst.msk [vmem:[#allocation4 + $0x8] sm:$0xff] %vm706_vm11, %v1261_v62 }
 0xd6e   :  { %1267 = vst.msk [vmem:[#allocation4 + $0x8] sm:$0xff] %vm711_vm14, %v1265_v3 }
 0xd6f   :  { %v1272_v51 = vpop.permute.xlu0 %1271 }
 0xd70   :  { %1274 = vst.msk [vmem:[#allocation4 + $0x8] sm:$0xff] %vm719_vm0, %v1272_v51  ;;  %v1287_v12 = vpop.permute.xlu1 %1286 }
 0xd71   :  { %1285 = vst.msk [vmem:[#allocation4 + $0x8] sm:$0xff] %vm731_vm1, %v1283_v46 }
 0xd72   :  { %1289 = vst.msk [vmem:[#allocation4 + $0x8] sm:$0xff] %vm736_vm6, %v1287_v12 }
 0xd77   :  { %v734_v47 = vpop.permute.xlu0 %733 }
 0xd78   :  { %737 = vst.msk [vmem:[#allocation4] sm:$0xff] %vm736_vm6, %v734_v47 }
 0xd79   :  { %1304 = dma.vmem_to_hbm [thread:$0]  %s1297_s2, 256, %s1299_s6, [#allocation5], %s1613_s28, %s1613_s28, %s1614_s29  }
 0xd7a   :  { %1575 = dma.done.wait [#allocation5], 256  }
 0xd7b   :  { %1576 = vsyncadd [#allocation5], 4294967040 }
 0xd7c   :  { %1311 = vsyncpa [#allocation5], 1 }

</bundles_post_ra>
